<compile_context>
chip_gen: v6e
topology: v6e:2x2x1
jax: 0.10.0
libtpu: 0.0.40
codegen_flags: <defaults>
</compile_context>

<pallas_src>
import math

import jax
import jax.numpy as jnp
from jax.experimental import pallas as pl
from jax.experimental.pallas import tpu as pltpu

_INV_SQRT2 = 1.0 / math.sqrt(2.0)


def ffn_kernel(x_ref, wv_ref, bv_ref, wg_ref, bg_ref, w2_ref, b2_ref,
               o_ref, acc_ref):
    """One (tm rows) x (th hidden) step of the fused FeedForward."""
    j = pl.program_id(1)

    x = x_ref[...]                                        # (tm, dim) native dtype

    # First projection, split into value / gate halves (MXU, f32 accumulation).
    val = jnp.dot(x, wv_ref[...], preferred_element_type=jnp.float32)
    val = val + bv_ref[...].astype(jnp.float32)           # (tm, th)
    gates = jnp.dot(x, wg_ref[...], preferred_element_type=jnp.float32)
    gates = gates + bg_ref[...].astype(jnp.float32)       # (tm, th)

    # Exact erf GELU (matches torch.nn.functional.gelu(approximate='none')).
    # TODO(synk): tanh-approx GELU would route work to the EUP slot (helps
    # VALU-bound small-dim configs) but no longer bit-matches torch's default.
    gelu_gates = 0.5 * gates * (1.0 + jax.lax.erf(gates * _INV_SQRT2))
    g = (val * gelu_gates).astype(w2_ref.dtype)           # back to native dtype

    partial = jnp.dot(g, w2_ref[...], preferred_element_type=jnp.float32)

    @pl.when(j == 0)
    def _init():
        acc_ref[...] = jnp.zeros_like(acc_ref)

    acc_ref[...] += partial                               # (tm, dim) f32 accum

    @pl.when(j == pl.num_programs(1) - 1)
    def _finalize():
        out = acc_ref[...] + b2_ref[...].astype(jnp.float32)
        o_ref[...] = out.astype(o_ref.dtype)


def _round_down(x, m):
    return max(m, (x // m) * m)


def _round_up(x, m):
    return ((x + m - 1) // m) * m


def _tpu_vmem_capacity():
    """Physical VMEM bytes of the attached TPU (fallback: 128 MiB)."""
    try:
        return int(pltpu.get_tpu_info().vmem_capacity_bytes)
    except Exception:
        return 128 << 20


def _const_spec(shape, imap, single_buffer):
    """BlockSpec for a block whose index never changes; single-buffer if we can."""
    if single_buffer and hasattr(pl, "Buffered"):
        try:
            return pl.BlockSpec(shape, imap, pipeline_mode=pl.Buffered(1))
        except TypeError:  # jax without BlockSpec(pipeline_mode=...)
            pass
    return pl.BlockSpec(shape, imap)


def feed_forward(x, w1, b1, w2, b2, *, tm=None, th=None):
    """x: (B, S, dim); w1: (dim, 2H); b1: (2H,); w2: (H, dim); b2: (dim,)."""
    B, S, dim = x.shape
    H = w2.shape[0]
    assert w1.shape == (dim, 2 * H) and b1.shape == (2 * H,)
    assert w2.shape == (H, dim) and b2.shape == (dim,)

    M = B * S
    x2d = x.reshape(M, dim)
    m8 = _round_up(M, 8)

    a_item = jnp.dtype(x.dtype).itemsize
    w_item = jnp.dtype(w1.dtype).itemsize

    vmem_cap = _tpu_vmem_capacity()
    likely_v7x = vmem_cap < (100 << 20)          # 64 MiB/TC generation
    budget = int(0.70 * vmem_cap)                # planning budget for live blocks

    # --- hidden tiling --------------------------------------------------------
    # Keep weights fully resident (n_h == 1, single-buffered -> DMA'd once for
    # the whole kernel) whenever they fit ~25% of VMEM.
    resident_w_bytes = (2 * dim * H + 2 * H + H * dim) * w_item + dim * w_item
    if th is None:
        if H % 128 != 0 or resident_w_bytes <= int(0.25 * vmem_cap):
            th_eff = H
        else:
            cand = 256 if likely_v7x else 512
            th_eff = _round_down(min(cand, H), 128)
            while H % th_eff != 0:
                th_eff -= 128
    else:
        if H % 128 == 0:
            th_eff = _round_down(min(th, H), 128)
            while H % th_eff != 0:
                th_eff -= 128
        else:
            th_eff = H
    n_h = H // th_eff
    weights_const = (n_h == 1)      # weight block index never changes

    # --- VMEM accounting (per row of tm, incl. double-buffering + f32 temps) --
    buf_w = 1 if weights_const else 2
    w_blk_bytes = (buf_w * (2 * dim * th_eff + 2 * th_eff + th_eff * dim) * w_item
                   + dim * w_item)
    per_row_bytes = (
        4 * dim * a_item                      # x + out blocks, double-buffered
        + dim * 4                             # f32 accumulator
        + (4 * th_eff + dim) * 4              # val/gates/gelu/partial f32 temps
        + th_eff * a_item                     # g cast back to native dtype
    )

    # --- row tiling: generation-aware target, clamped to the VMEM budget ------
    if tm is None:
        target = 512 if likely_v7x else 1024      # >= roofline crossover per gen
        avail = max(0, budget - w_blk_bytes)
        tm = max(64, min(target, avail // max(1, per_row_bytes)))
    tm_eff = _round_down(min(tm, m8), 8)
    n_m = pl.cdiv(M, tm_eff)

    # v7x has 2 TensorCores: keep the parallel row axis evenly splittable.
    if likely_v7x and n_m > 1 and n_m % 2 == 1:
        n_m += 1
        tm_eff = max(8, _round_up(pl.cdiv(M, n_m), 8))

    Mp = n_m * tm_eff
    if Mp != M:
        x2d = jnp.pad(x2d, ((0, Mp - M), (0, 0)))

    # --- scoped VMEM limit: blocks + f32 temporaries, capped at physical VMEM -
    est = tm_eff * per_row_bytes + w_blk_bytes
    vmem_limit = int(max(32 << 20,
                         min(int(0.85 * vmem_cap), int(1.3 * est) + (8 << 20))))

    # Split W1 / b1 into value & gate halves (GEGLU pairing).
    w1_val, w1_gate = w1[:, :H], w1[:, H:]
    b1_val = b1[:H].reshape(1, H)
    b1_gate = b1[H:].reshape(1, H)
    b2_2d = b2.reshape(1, dim)

    grid_spec = pltpu.PrefetchScalarGridSpec(
        num_scalar_prefetch=0,
        grid=(n_m, n_h),
        in_specs=[
            pl.BlockSpec((tm_eff, dim), lambda i, j: (i, 0)),                  # x rows
            _const_spec((dim, th_eff), lambda i, j: (0, j), weights_const),    # W1 value
            _const_spec((1, th_eff), lambda i, j: (0, j), weights_const),      # b1 value
            _const_spec((dim, th_eff), lambda i, j: (0, j), weights_const),    # W1 gate
            _const_spec((1, th_eff), lambda i, j: (0, j), weights_const),      # b1 gate
            _const_spec((th_eff, dim), lambda i, j: (j, 0), weights_const),    # W2
            _const_spec((1, dim), lambda i, j: (0, 0), True),                  # b2
        ],
        out_specs=pl.BlockSpec((tm_eff, dim), lambda i, j: (i, 0)),
        scratch_shapes=[pltpu.VMEM((tm_eff, dim), jnp.float32)],
    )

    out2d = pl.pallas_call(
        ffn_kernel,
        out_shape=jax.ShapeDtypeStruct((Mp, dim), x.dtype),
        grid_spec=grid_spec,
        compiler_params=pltpu.CompilerParams(
            dimension_semantics=("parallel", "arbitrary"),
            vmem_limit_bytes=vmem_limit,
        ),
    )(x2d, w1_val, b1_val, w1_gate, b1_gate, w2, b2_2d)

    return out2d[:M].reshape(B, S, dim)


def feed_forward_ref(x, w1, b1, w2, b2):
    """Pure-JAX reference with identical semantics (f32 math)."""
    H = w2.shape[0]
    h = jnp.einsum("bsd,dh->bsh", x.astype(jnp.float32),
                   w1.astype(jnp.float32)) + b1.astype(jnp.float32)
    val, gates = h[..., :H], h[..., H:]
    g = val * (0.5 * gates * (1.0 + jax.lax.erf(gates * _INV_SQRT2)))
    out = jnp.einsum("bsh,hd->bsd", g,
                     w2.astype(jnp.float32)) + b2.astype(jnp.float32)
    return out.astype(x.dtype)


if __name__ == "__main__":
    # Small shapes consistent with the module; dim is a multiple of 128 so
    # output stores are lane-dense.  dim=128, mult=4 -> hidden H=512.
    B, S, dim, mult = 2, 64, 128, 4
    H = dim * mult

    key = jax.random.PRNGKey(0)
    kx, k1, k2, k3, k4 = jax.random.split(key, 5)

    x = jax.random.normal(kx, (B, S, dim), dtype=jnp.float32)
    w1 = jax.random.normal(k1, (dim, 2 * H), dtype=jnp.float32) * (1.0 / math.sqrt(dim))
    b1 = jax.random.normal(k2, (2 * H,), dtype=jnp.float32) * 0.01
    w2 = jax.random.normal(k3, (H, dim), dtype=jnp.float32) * (1.0 / math.sqrt(H))
    b2 = jax.random.normal(k4, (dim,), dtype=jnp.float32) * 0.01

    # 1) auto (generation-aware) tiles: weights fully resident, single hidden chunk.
    out = jax.block_until_ready(feed_forward(x, w1, b1, w2, b2))
    ref = feed_forward_ref(x, w1, b1, w2, b2)
    assert out.shape == (B, S, dim)
    assert jnp.allclose(out, ref, atol=2e-3, rtol=2e-3), float(
        jnp.max(jnp.abs(out - ref)))

    # 2) multi-step grid: ragged row count (padding path) + 2 hidden chunks
    #    (exercises the accumulator init/finalize and the hidden reduction).
    x2 = jax.random.normal(kx, (3, 50, dim), dtype=jnp.float32)
    out2 = jax.block_until_ready(feed_forward(x2, w1, b1, w2, b2, tm=64, th=256))
    ref2 = feed_forward_ref(x2, w1, b1, w2, b2)
    assert out2.shape == (3, 50, dim)
    assert jnp.allclose(out2, ref2, atol=2e-3, rtol=2e-3), float(
        jnp.max(jnp.abs(out2 - ref2)))

    # 3) bf16 operands (caller-side cast, as recommended for v6e/v7x): native
    #    dtype MXU dots with f32 accumulation; looser tolerance vs f32 ref.
    xb, w1b, b1b = x.astype(jnp.bfloat16), w1.astype(jnp.bfloat16), b1.astype(jnp.bfloat16)
    w2b, b2b = w2.astype(jnp.bfloat16), b2.astype(jnp.bfloat16)
    out3 = jax.block_until_ready(feed_forward(xb, w1b, b1b, w2b, b2b))
    ref3 = feed_forward_ref(xb, w1b, b1b, w2b, b2b)
    assert out3.shape == (B, S, dim)
    assert jnp.allclose(out3.astype(jnp.float32), ref3.astype(jnp.float32),
                        atol=1e-1, rtol=1e-1), float(
        jnp.max(jnp.abs(out3.astype(jnp.float32) - ref3.astype(jnp.float32))))

    print("KERNEL_OK")
</pallas_src>

<mosaic_0001>
module attributes {stable_mosaic.version = 11 : i64} {
  func.func @ffn_kernel(%arg0: i32, %arg1: i32, %arg2: memref<128x128xf32, #tpu.memory_space<vmem>>, %arg3: memref<128x512xf32, #tpu.memory_space<vmem>>, %arg4: memref<1x512xf32, #tpu.memory_space<vmem>>, %arg5: memref<128x512xf32, #tpu.memory_space<vmem>>, %arg6: memref<1x512xf32, #tpu.memory_space<vmem>>, %arg7: memref<512x128xf32, #tpu.memory_space<vmem>>, %arg8: memref<1x128xf32, #tpu.memory_space<vmem>>, %arg9: memref<128x128xf32, #tpu.memory_space<vmem>>, %arg10: memref<128x128xf32, #tpu.memory_space<vmem>>) attributes {dimension_semantics = [#tpu.dimension_semantics<parallel>, #tpu.dimension_semantics<arbitrary>], iteration_bounds = array<i64: 1, 1>, scalar_prefetch = 0 : i64, scratch_operands = 1 : i64, tpu.core_type = #tpu.core_type<tc>, window_params = [{transform_indices = @transform_0, window_bounds = array<i64: 128, 128>}, {pipeline_mode = #tpu.pipeline_mode<synchronous>, transform_indices = @transform_1, window_bounds = array<i64: 128, 512>}, {pipeline_mode = #tpu.pipeline_mode<synchronous>, transform_indices = @transform_2, window_bounds = array<i64: 1, 512>}, {pipeline_mode = #tpu.pipeline_mode<synchronous>, transform_indices = @transform_3, window_bounds = array<i64: 128, 512>}, {pipeline_mode = #tpu.pipeline_mode<synchronous>, transform_indices = @transform_4, window_bounds = array<i64: 1, 512>}, {pipeline_mode = #tpu.pipeline_mode<synchronous>, transform_indices = @transform_5, window_bounds = array<i64: 512, 128>}, {pipeline_mode = #tpu.pipeline_mode<synchronous>, transform_indices = @transform_6, window_bounds = array<i64: 1, 128>}, {transform_indices = @transform_7, window_bounds = array<i64: 128, 128>}]} {
    %c0 = arith.constant 0 : index
    %c0_0 = arith.constant 0 : index
    %0 = vector.load %arg2[%c0, %c0_0] : memref<128x128xf32, #tpu.memory_space<vmem>>, vector<128x128xf32>
    %c0_1 = arith.constant 0 : index
    %c0_2 = arith.constant 0 : index
    %1 = vector.load %arg3[%c0_1, %c0_2] : memref<128x512xf32, #tpu.memory_space<vmem>>, vector<128x512xf32>
    %cst = arith.constant dense<0.000000e+00> : vector<128x512xf32>
    %2 = tpu.matmul %0, %1, %cst {dimension_numbers = #tpu.dot_dimension_numbers<[1], [0], [0], [1], [0, 0, 1, 1], [], []>} : vector<128x128xf32>, vector<128x512xf32>, vector<128x512xf32> -> vector<128x512xf32>
    %c0_3 = arith.constant 0 : index
    %c0_4 = arith.constant 0 : index
    %3 = vector.load %arg4[%c0_3, %c0_4] : memref<1x512xf32, #tpu.memory_space<vmem>>, vector<1x512xf32>
    %4 = vector.broadcast %3 : vector<1x512xf32> to vector<128x512xf32>
    %5 = arith.addf %2, %4 : vector<128x512xf32>
    %c0_5 = arith.constant 0 : index
    %c0_6 = arith.constant 0 : index
    %6 = vector.load %arg5[%c0_5, %c0_6] : memref<128x512xf32, #tpu.memory_space<vmem>>, vector<128x512xf32>
    %cst_7 = arith.constant dense<0.000000e+00> : vector<128x512xf32>
    %7 = tpu.matmul %0, %6, %cst_7 {dimension_numbers = #tpu.dot_dimension_numbers<[1], [0], [0], [1], [0, 0, 1, 1], [], []>} : vector<128x128xf32>, vector<128x512xf32>, vector<128x512xf32> -> vector<128x512xf32>
    %c0_8 = arith.constant 0 : index
    %c0_9 = arith.constant 0 : index
    %8 = vector.load %arg6[%c0_8, %c0_9] : memref<1x512xf32, #tpu.memory_space<vmem>>, vector<1x512xf32>
    %9 = vector.broadcast %8 : vector<1x512xf32> to vector<128x512xf32>
    %10 = arith.addf %7, %9 : vector<128x512xf32>
    %cst_10 = arith.constant 5.000000e-01 : f32
    %11 = vector.broadcast %cst_10 : f32 to vector<128x512xf32>
    %12 = arith.mulf %11, %10 : vector<128x512xf32>
    %cst_11 = arith.constant 0.707106769 : f32
    %13 = vector.broadcast %cst_11 : f32 to vector<128x512xf32>
    %14 = arith.mulf %10, %13 : vector<128x512xf32>
    %15 = math.erf %14 : vector<128x512xf32>
    %cst_12 = arith.constant 1.000000e+00 : f32
    %16 = vector.broadcast %cst_12 : f32 to vector<128x512xf32>
    %17 = arith.addf %16, %15 : vector<128x512xf32>
    %18 = arith.mulf %12, %17 : vector<128x512xf32>
    %19 = arith.mulf %5, %18 : vector<128x512xf32>
    %c0_13 = arith.constant 0 : index
    %c0_14 = arith.constant 0 : index
    %20 = vector.load %arg7[%c0_13, %c0_14] : memref<512x128xf32, #tpu.memory_space<vmem>>, vector<512x128xf32>
    %cst_15 = arith.constant dense<0.000000e+00> : vector<128x128xf32>
    %21 = tpu.matmul %19, %20, %cst_15 {dimension_numbers = #tpu.dot_dimension_numbers<[1], [0], [0], [1], [0, 0, 1, 1], [], []>} : vector<128x512xf32>, vector<512x128xf32>, vector<128x128xf32> -> vector<128x128xf32>
    %c0_i32 = arith.constant 0 : i32
    %22 = arith.cmpi eq, %arg1, %c0_i32 : i32
    %23 = arith.extui %22 : i1 to i32
    %c0_i32_16 = arith.constant 0 : i32
    %24 = arith.cmpi ne, %23, %c0_i32_16 : i32
    scf.if %24 {
      %cst_23 = arith.constant 0.000000e+00 : f32
      %31 = vector.broadcast %cst_23 : f32 to vector<128x128xf32>
      %c0_24 = arith.constant 0 : index
      %c0_25 = arith.constant 0 : index
      %32 = vector.load %arg10[%c0_24, %c0_25] : memref<128x128xf32, #tpu.memory_space<vmem>>, vector<128x128xf32>
      tpu.vector_store %arg10[%c0_24, %c0_25], %31 {strides = array<i32>} : memref<128x128xf32, #tpu.memory_space<vmem>>, vector<128x128xf32>,
    } else {
    }
    %c0_17 = arith.constant 0 : index
    %c0_18 = arith.constant 0 : index
    %25 = vector.load %arg10[%c0_17, %c0_18] : memref<128x128xf32, #tpu.memory_space<vmem>>, vector<128x128xf32>
    %26 = arith.addf %25, %21 : vector<128x128xf32>
    %c0_19 = arith.constant 0 : index
    %c0_20 = arith.constant 0 : index
    %27 = vector.load %arg10[%c0_19, %c0_20] : memref<128x128xf32, #tpu.memory_space<vmem>>, vector<128x128xf32>
    tpu.vector_store %arg10[%c0_19, %c0_20], %26 {strides = array<i32>} : memref<128x128xf32, #tpu.memory_space<vmem>>, vector<128x128xf32>,
    %c0_i32_21 = arith.constant 0 : i32
    %28 = arith.cmpi eq, %arg1, %c0_i32_21 : i32
    %29 = arith.extui %28 : i1 to i32
    %c0_i32_22 = arith.constant 0 : i32
    %30 = arith.cmpi ne, %29, %c0_i32_22 : i32
    scf.if %30 {
      %c0_23 = arith.constant 0 : index
      %c0_24 = arith.constant 0 : index
      %31 = vector.load %arg10[%c0_23, %c0_24] : memref<128x128xf32, #tpu.memory_space<vmem>>, vector<128x128xf32>
      %c0_25 = arith.constant 0 : index
      %c0_26 = arith.constant 0 : index
      %32 = vector.load %arg8[%c0_25, %c0_26] : memref<1x128xf32, #tpu.memory_space<vmem>>, vector<1x128xf32>
      %33 = vector.broadcast %32 : vector<1x128xf32> to vector<128x128xf32>
      %34 = arith.addf %31, %33 : vector<128x128xf32>
      %c0_27 = arith.constant 0 : index
      %c0_28 = arith.constant 0 : index
      %35 = vector.load %arg9[%c0_27, %c0_28] : memref<128x128xf32, #tpu.memory_space<vmem>>, vector<128x128xf32>
      tpu.vector_store %arg9[%c0_27, %c0_28], %34 {strides = array<i32>} : memref<128x128xf32, #tpu.memory_space<vmem>>, vector<128x128xf32>,
    } else {
    }
    return
  }
  func.func @transform_0(%arg0: i32, %arg1: i32) -> (i32, i32) {
    %c0_i32 = arith.constant 0 : i32
    %c0_i32_0 = arith.constant 0 : i32
    return %arg0, %c0_i32 : i32, i32
  }
  func.func @transform_1(%arg0: i32, %arg1: i32) -> (i32, i32) {
    %c0_i32 = arith.constant 0 : i32
    %c0_i32_0 = arith.constant 0 : i32
    return %c0_i32, %arg1 : i32, i32
  }
  func.func @transform_2(%arg0: i32, %arg1: i32) -> (i32, i32) {
    %c0_i32 = arith.constant 0 : i32
    %c0_i32_0 = arith.constant 0 : i32
    return %c0_i32, %arg1 : i32, i32
  }
  func.func @transform_3(%arg0: i32, %arg1: i32) -> (i32, i32) {
    %c0_i32 = arith.constant 0 : i32
    %c0_i32_0 = arith.constant 0 : i32
    return %c0_i32, %arg1 : i32, i32
  }
  func.func @transform_4(%arg0: i32, %arg1: i32) -> (i32, i32) {
    %c0_i32 = arith.constant 0 : i32
    %c0_i32_0 = arith.constant 0 : i32
    return %c0_i32, %arg1 : i32, i32
  }
  func.func @transform_5(%arg0: i32, %arg1: i32) -> (i32, i32) {
    %c0_i32 = arith.constant 0 : i32
    %c0_i32_0 = arith.constant 0 : i32
    return %arg1, %c0_i32 : i32, i32
  }
  func.func @transform_6(%arg0: i32, %arg1: i32) -> (i32, i32) {
    %c0_i32 = arith.constant 0 : i32
    %c0_i32_0 = arith.constant 0 : i32
    %c0_i32_1 = arith.constant 0 : i32
    return %c0_i32, %c0_i32_0 : i32, i32
  }
  func.func @transform_7(%arg0: i32, %arg1: i32) -> (i32, i32) {
    %c0_i32 = arith.constant 0 : i32
    %c0_i32_0 = arith.constant 0 : i32
    return %arg0, %c0_i32 : i32, i32
  }
}

</mosaic_0001>

<bundles_post_ra>
// kernel: tpu_custom_call.1
= control target key start
LH: loop header
LB: loop body
LE: loop exit
PB: predicated region body
PF: predicated region fallthrough
CT: control target
= control target key end

     0   :  { %12 = vsyncpa [#allocation4], 0  ;;  %s3427_s0 = inlined_call_operand.hbm [shape: f32[128,128], index: 0, kind: input, shape index: {}]   ;;  %s3428_s1 = inlined_call_operand.hbm [shape: f32[128,512], index: 1, kind: input, shape index: {}]   ;;  %s3429_s2 = inlined_call_operand.hbm [shape: f32[1,512], index: 2, kind: input, shape index: {}]   ;;  %s3430_s3 = inlined_call_operand.hbm [shape: f32[128,512], index: 3, kind: input, shape index: {}]   ;;  %s3431_s4 = inlined_call_operand.vmem [shape: f32[1,512], index: 4, kind: input, shape index: {}]   ;;  %s3432_s5 = inlined_call_operand.hbm [shape: f32[512,128], index: 5, kind: input, shape index: {}]   ;;  %s3433_s6 = inlined_call_operand.vmem [shape: f32[1,128], index: 6, kind: input, shape index: {}]   ;;  %s3434_s7 = inlined_call_operand.hbm [shape: f32[128,128], index: 7, kind: output, shape index: {}]  }
   0x1   :  { %13 = vsyncpa [#allocation7], 0 }
   0x2   :  { %14 = vsyncpa [#allocation10], 0 }
   0x3   :  { %15 = vsyncpa [#allocation5], 0  ;;  %s2236_s24 = smov [#allocation6]  }
   0x4   :  { %s33_s25 = sshll.u32 %s2236_s24, 4  ;;  %s34_s25 = int_to_ptr.vmem [resolvable:$true] %s33_s25 }
   0x5   :  { %s2116_s26 = scalar_lea.vmem %s34_s25, 8192  ;;  %p2121_p1 = scmp.lt.s32.totalorder %s34_s25, %s34_s25 }
   0x6   :  { %p2117_p0 = scmp.ne.s32.totalorder %s34_s25, %s2116_s26  ;;  %p2122_p2 = scmp.lt.s32.totalorder %s2116_s26, %s2116_s26 }
   0x8   :  { %p2123_p3 = por %p2122_p2, %p2121_p1 }
   0xa   :  { %p2124_p4 = pnand %p2123_p3, %p2117_p0 }
   0xc   :  { %2127 = shalt.err (!%p2124_p4)
}
   0xd   :  { %s2237_s27 = smov 512   ;;  %s2238_s28 = smov 32  }
   0xe   :  { %39 = dma.hbm_to_vmem [thread:$0]  %s3428_s1, 8192, %s34_s25, [#allocation7], %s2237_s27, %s2237_s27, %s2238_s28  }
   0xf   :  { %s2239_s8 = smov [#allocation9]   ;;  %s2240_s10 = smov [#allocation3]  }
  0x10   :  { %s55_s9 = sshll.u32 %s2239_s8, 4  ;;  %s21_s11 = sshll.u32 %s2240_s10, 4  ;;  %s56_s9 = int_to_ptr.vmem [resolvable:$true] %s55_s9  ;;  %s22_s11 = int_to_ptr.vmem [resolvable:$true] %s21_s11 }
  0x11   :  { %s2136_s12 = scalar_lea.vmem %s56_s9, 8192  ;;  %p2141_p6 = scmp.lt.s32.totalorder %s56_s9, %s56_s9 }
  0x12   :  { %p2137_p5 = scmp.ne.s32.totalorder %s56_s9, %s2136_s12  ;;  %p2142_p7 = scmp.lt.s32.totalorder %s2136_s12, %s2136_s12 }
  0x14   :  { %p2143_p8 = por %p2142_p7, %p2141_p6 }
  0x16   :  { %p2144_p9 = pnand %p2143_p8, %p2137_p5 }
  0x18   :  { %2147 = shalt.err (!%p2144_p9)
}
  0x19   :  { %61 = dma.hbm_to_vmem [thread:$0]  %s3430_s3, 8192, %s56_s9, [#allocation10], %s2237_s27, %s2237_s27, %s2238_s28  }
  0x1a   :  { %s2156_s15 = scalar_lea.vmem %s22_s11, 2048  ;;  %p2161_p11 = scmp.lt.s32.totalorder %s22_s11, %s22_s11 }
  0x1b   :  { %p2157_p10 = scmp.ne.s32.totalorder %s22_s11, %s2156_s15  ;;  %p2162_p12 = scmp.lt.s32.totalorder %s2156_s15, %s2156_s15 }
  0x1d   :  { %p2163_p13 = por %p2162_p12, %p2161_p11 }
  0x1f   :  { %p2164_p0 = pnand %p2163_p13, %p2157_p10 }
  0x21   :  { %2167 = shalt.err (!%p2164_p0)
}
  0x22   :  { %s2241_s1 = smov 128   ;;  %s2242_s16 = smov 8  }
  0x23   :  { %27 = dma.hbm_to_vmem [thread:$0]  %s3427_s0, 2048, %s22_s11, [#allocation4], %s2241_s1, %s2241_s1, %s2242_s16  }
  0x24   :  { %s2243_s19 = smov [#allocation8]   ;;  %s2244_s3 = smov [#allocation11]  }
  0x25   :  { %s46_s20 = sshll.u32 %s2243_s19, 4  ;;  %s69_s21 = sshll.u32 %s2244_s3, 4  ;;  %s47_s20 = int_to_ptr.vmem [resolvable:$true] %s46_s20  ;;  %s70_s21 = int_to_ptr.vmem [resolvable:$true] %s69_s21 }
  0x26   :  { %s2176_s22 = scalar_lea.vmem %s47_s20, 64  ;;  %p2181_p2 = scmp.lt.s32.totalorder %s47_s20, %s47_s20 }
  0x27   :  { %p2177_p1 = scmp.ne.s32.totalorder %s47_s20, %s2176_s22  ;;  %p2182_p3 = scmp.lt.s32.totalorder %s2176_s22, %s2176_s22 }
  0x29   :  { %p2183_p4 = por %p2182_p3, %p2181_p2 }
  0x2b   :  { %p2184_p5 = pnand %p2183_p4, %p2177_p1 }
  0x2d   :  { %2187 = shalt.err (!%p2184_p5)
}
  0x2e   :  { %49 = dma.hbm_to_vmem [thread:$0]  %s3429_s2, 64, %s47_s20, [#allocation7]  }
  0x2f   :  { %s2196_s25 = scalar_lea.vmem %s70_s21, 8192  ;;  %p2201_p7 = scmp.lt.s32.totalorder %s70_s21, %s70_s21 }
  0x30   :  { %p2197_p6 = scmp.ne.s32.totalorder %s70_s21, %s2196_s25  ;;  %p2202_p8 = scmp.lt.s32.totalorder %s2196_s25, %s2196_s25 }
  0x32   :  { %p2203_p9 = por %p2202_p8, %p2201_p7 }
  0x34   :  { %p2204_p10 = pnand %p2203_p9, %p2197_p6 }
  0x36   :  { %2207 = shalt.err (!%p2204_p10)
}
  0x37   :  { %75 = dma.hbm_to_vmem [thread:$0]  %s3432_s5, 8192, %s70_s21, [#allocation10], %s2241_s1, %s2241_s1, %s2242_s16  }
  0x38   :  { %2228 = dma.done.wait [#allocation4], 2048  }
  0x39   :  { %2229 = vsyncadd [#allocation4], 4294965248 }
  0x3a   :  { %2230 = dma.done.wait [#allocation7], 8256  }
  0x3b   :  { %2231 = vsyncadd [#allocation7], 4294959040 }
  0x3c   :  { %2232 = dma.done.wait [#allocation10], 16384  }
  0x3d   :  { %2233 = vsyncadd [#allocation10], 4294950912  ;;  %v2245_v0 = vmov 0.0   ;;  %v170_v1 = vld [vmem:[#allocation6 + $0x1e8] sm:$0xff]  ;;  %v172_v2 = vld [vmem:[#allocation6 + $0x1f8] sm:$0xff] }
  0x3e   :  { %259 = vmatprep.mubr.f32.mxu0 %v2245_v0  ;;  %420 = vmatprep.mubr.f32.mxu1 %v2245_v0  ;;  %v169_v3 = vld [vmem:[#allocation6 + $0x1e0] sm:$0xff]  ;;  %v171_v4 = vld [vmem:[#allocation6 + $0x1f0] sm:$0xff]  ;;  %v166_v5 = vld [vmem:[#allocation6 + $0x1c8] sm:$0xff] }
  0x3f   :  { %195 = vmatprep.subr.mxu0 %v170_v1  ;;  %356 = vmatprep.subr.mxu1 %v172_v2  ;;  %v168_v6 = vld [vmem:[#allocation6 + $0x1d8] sm:$0xff]  ;;  %v165_v7 = vld [vmem:[#allocation6 + $0x1c0] sm:$0xff]  ;;  %v167_v8 = vld [vmem:[#allocation6 + $0x1d0] sm:$0xff] }
  0x40   :  { %196 = vmatpush1.msra.mxu0 %v169_v3  ;;  %357 = vmatpush1.msra.mxu1 %v171_v4  ;;  %v162_v9 = vld [vmem:[#allocation6 + $0x1a8] sm:$0xff]  ;;  %v164_v10 = vld [vmem:[#allocation6 + $0x1b8] sm:$0xff]  ;;  %v161_v11 = vld [vmem:[#allocation6 + $0x1a0] sm:$0xff] }
  0x41   :  { %197 = vmatprep.subr.mxu0 %v166_v5  ;;  %358 = vmatprep.subr.mxu1 %v168_v6  ;;  %v163_v12 = vld [vmem:[#allocation6 + $0x1b0] sm:$0xff]  ;;  %v158_v13 = vld [vmem:[#allocation6 + $0x188] sm:$0xff]  ;;  %v160_v14 = vld [vmem:[#allocation6 + $0x198] sm:$0xff] }
  0x42   :  { %198 = vmatpush1.msra.mxu0 %v165_v7  ;;  %359 = vmatpush1.msra.mxu1 %v167_v8  ;;  %v157_v15 = vld [vmem:[#allocation6 + $0x180] sm:$0xff]  ;;  %v159_v16 = vld [vmem:[#allocation6 + $0x190] sm:$0xff]  ;;  %v154_v17 = vld [vmem:[#allocation6 + $0x168] sm:$0xff] }
  0x43   :  { %199 = vmatprep.subr.mxu0 %v162_v9  ;;  %360 = vmatprep.subr.mxu1 %v164_v10  ;;  %v156_v18 = vld [vmem:[#allocation6 + $0x178] sm:$0xff]  ;;  %v153_v19 = vld [vmem:[#allocation6 + $0x160] sm:$0xff]  ;;  %v155_v20 = vld [vmem:[#allocation6 + $0x170] sm:$0xff] }
  0x44   :  { %200 = vmatpush1.msra.mxu0 %v161_v11  ;;  %361 = vmatpush1.msra.mxu1 %v163_v12  ;;  %v150_v21 = vld [vmem:[#allocation6 + $0x148] sm:$0xff]  ;;  %v152_v22 = vld [vmem:[#allocation6 + $0x158] sm:$0xff]  ;;  %v149_v23 = vld [vmem:[#allocation6 + $0x140] sm:$0xff] }
  0x45   :  { %201 = vmatprep.subr.mxu0 %v158_v13  ;;  %362 = vmatprep.subr.mxu1 %v160_v14  ;;  %v151_v24 = vld [vmem:[#allocation6 + $0x150] sm:$0xff]  ;;  %v146_v25 = vld [vmem:[#allocation6 + $0x128] sm:$0xff]  ;;  %v148_v26 = vld [vmem:[#allocation6 + $0x138] sm:$0xff] }
  0x46   :  { %202 = vmatpush1.msra.mxu0 %v157_v15  ;;  %363 = vmatpush1.msra.mxu1 %v159_v16  ;;  %v145_v27 = vld [vmem:[#allocation6 + $0x120] sm:$0xff]  ;;  %v147_v28 = vld [vmem:[#allocation6 + $0x130] sm:$0xff]  ;;  %v142_v29 = vld [vmem:[#allocation6 + $0x108] sm:$0xff] }
  0x47   :  { %203 = vmatprep.subr.mxu0 %v154_v17  ;;  %364 = vmatprep.subr.mxu1 %v156_v18  ;;  %v144_v30 = vld [vmem:[#allocation6 + $0x118] sm:$0xff]  ;;  %v141_v31 = vld [vmem:[#allocation6 + $0x100] sm:$0xff]  ;;  %v143_v32 = vld [vmem:[#allocation6 + $0x110] sm:$0xff] }
  0x48   :  { %204 = vmatpush1.msra.mxu0 %v153_v19  ;;  %365 = vmatpush1.msra.mxu1 %v155_v20  ;;  %v138_v33 = vld [vmem:[#allocation6 + $0xe8] sm:$0xff]  ;;  %v140_v34 = vld [vmem:[#allocation6 + $0xf8] sm:$0xff]  ;;  %v137_v35 = vld [vmem:[#allocation6 + $0xe0] sm:$0xff] }
  0x49   :  { %205 = vmatprep.subr.mxu0 %v150_v21  ;;  %366 = vmatprep.subr.mxu1 %v152_v22  ;;  %v139_v36 = vld [vmem:[#allocation6 + $0xf0] sm:$0xff]  ;;  %v134_v37 = vld [vmem:[#allocation6 + $0xc8] sm:$0xff]  ;;  %v136_v38 = vld [vmem:[#allocation6 + $0xd8] sm:$0xff] }
  0x4a   :  { %206 = vmatpush1.msra.mxu0 %v149_v23  ;;  %367 = vmatpush1.msra.mxu1 %v151_v24  ;;  %v133_v39 = vld [vmem:[#allocation6 + $0xc0] sm:$0xff]  ;;  %v135_v40 = vld [vmem:[#allocation6 + $0xd0] sm:$0xff]  ;;  %v130_v41 = vld [vmem:[#allocation6 + $0xa8] sm:$0xff] }
  0x4b   :  { %207 = vmatprep.subr.mxu0 %v146_v25  ;;  %368 = vmatprep.subr.mxu1 %v148_v26  ;;  %v132_v42 = vld [vmem:[#allocation6 + $0xb8] sm:$0xff]  ;;  %v129_v43 = vld [vmem:[#allocation6 + $0xa0] sm:$0xff]  ;;  %v131_v44 = vld [vmem:[#allocation6 + $0xb0] sm:$0xff] }
  0x4c   :  { %208 = vmatpush1.msra.mxu0 %v145_v27  ;;  %369 = vmatpush1.msra.mxu1 %v147_v28  ;;  %v126_v45 = vld [vmem:[#allocation6 + $0x88] sm:$0xff]  ;;  %v128_v46 = vld [vmem:[#allocation6 + $0x98] sm:$0xff]  ;;  %v125_v47 = vld [vmem:[#allocation6 + $0x80] sm:$0xff] }
  0x4d   :  { %209 = vmatprep.subr.mxu0 %v142_v29  ;;  %370 = vmatprep.subr.mxu1 %v144_v30  ;;  %v127_v48 = vld [vmem:[#allocation6 + $0x90] sm:$0xff]  ;;  %v122_v49 = vld [vmem:[#allocation6 + $0x68] sm:$0xff]  ;;  %v124_v50 = vld [vmem:[#allocation6 + $0x78] sm:$0xff] }
  0x4e   :  { %210 = vmatpush1.msra.mxu0 %v141_v31  ;;  %371 = vmatpush1.msra.mxu1 %v143_v32  ;;  %v121_v51 = vld [vmem:[#allocation6 + $0x60] sm:$0xff]  ;;  %v123_v52 = vld [vmem:[#allocation6 + $0x70] sm:$0xff]  ;;  %v118_v53 = vld [vmem:[#allocation6 + $0x48] sm:$0xff] }
  0x4f   :  { %211 = vmatprep.subr.mxu0 %v138_v33  ;;  %372 = vmatprep.subr.mxu1 %v140_v34  ;;  %v120_v54 = vld [vmem:[#allocation6 + $0x58] sm:$0xff]  ;;  %v117_v55 = vld [vmem:[#allocation6 + $0x40] sm:$0xff]  ;;  %v119_v56 = vld [vmem:[#allocation6 + $0x50] sm:$0xff] }
  0x50   :  { %212 = vmatpush1.msra.mxu0 %v137_v35  ;;  %373 = vmatpush1.msra.mxu1 %v139_v36  ;;  %v114_v57 = vld [vmem:[#allocation6 + $0x28] sm:$0xff]  ;;  %v116_v58 = vld [vmem:[#allocation6 + $0x38] sm:$0xff]  ;;  %v113_v59 = vld [vmem:[#allocation6 + $0x20] sm:$0xff] }
  0x51   :  { %213 = vmatprep.subr.mxu0 %v134_v37  ;;  %374 = vmatprep.subr.mxu1 %v136_v38  ;;  %v115_v60 = vld [vmem:[#allocation6 + $0x30] sm:$0xff]  ;;  %v110_v61 = vld [vmem:[#allocation6 + $0x8] sm:$0xff]  ;;  %v112_v62 = vld [vmem:[#allocation6 + $0x18] sm:$0xff] }
  0x52   :  { %214 = vmatpush1.msra.mxu0 %v133_v39  ;;  %375 = vmatpush1.msra.mxu1 %v135_v40  ;;  %v109_v63 = vld [vmem:[#allocation6] sm:$0xff]  ;;  %v111_v1 = vld [vmem:[#allocation6 + $0x10] sm:$0xff]  ;;  %v2314_v7 = vld [vmem:[#allocation3 + $0x8] sm:$0xff] }
  0x53   :  { %215 = vmatprep.subr.mxu0 %v130_v41  ;;  %376 = vmatprep.subr.mxu1 %v132_v42  ;;  %v2310_v2 = vld [vmem:[#allocation3] sm:$0xff]  ;;  %v578_v3 = vld [vmem:[#allocation9 + $0x1e8] sm:$0xff]  ;;  %v579_v6 = vld [vmem:[#allocation9 + $0x1f0] sm:$0xff] }
  0x54   :  { %216 = vmatpush1.msra.mxu0 %v129_v43  ;;  %377 = vmatpush1.msra.mxu1 %v131_v44  ;;  %v580_v4 = vld [vmem:[#allocation9 + $0x1f8] sm:$0xff]  ;;  %v577_v5 = vld [vmem:[#allocation9 + $0x1e0] sm:$0xff]  ;;  %v574_v8 = vld [vmem:[#allocation9 + $0x1c8] sm:$0xff] }
  0x55   :  { %217 = vmatprep.subr.mxu0 %v126_v45  ;;  %378 = vmatprep.subr.mxu1 %v128_v46  ;;  %v576_v9 = vld [vmem:[#allocation9 + $0x1d8] sm:$0xff]  ;;  %v573_v10 = vld [vmem:[#allocation9 + $0x1c0] sm:$0xff]  ;;  %v575_v11 = vld [vmem:[#allocation9 + $0x1d0] sm:$0xff] }
  0x56   :  { %218 = vmatpush1.msra.mxu0 %v125_v47  ;;  %379 = vmatpush1.msra.mxu1 %v127_v48  ;;  %v2320_v12 = vld [vmem:[#allocation3 + $0x10] sm:$0xff]  ;;  %v572_v14 = vld [vmem:[#allocation9 + $0x1b8] sm:$0xff]  ;;  %v569_v15 = vld [vmem:[#allocation9 + $0x1a0] sm:$0xff] }
  0x57   :  { %219 = vmatprep.subr.mxu0 %v122_v49  ;;  %380 = vmatprep.subr.mxu1 %v124_v50  ;;  %v570_v13 = vld [vmem:[#allocation9 + $0x1a8] sm:$0xff]  ;;  %v571_v16 = vld [vmem:[#allocation9 + $0x1b0] sm:$0xff]  ;;  %v568_v19 = vld [vmem:[#allocation9 + $0x198] sm:$0xff] }
  0x58   :  { %220 = vmatpush1.msra.mxu0 %v121_v51  ;;  %381 = vmatpush1.msra.mxu1 %v123_v52  ;;  %v2326_v17 = vld [vmem:[#allocation3 + $0x18] sm:$0xff]  ;;  %v566_v18 = vld [vmem:[#allocation9 + $0x188] sm:$0xff]  ;;  %v565_v20 = vld [vmem:[#allocation9 + $0x180] sm:$0xff] }
  0x59   :  { %221 = vmatprep.subr.mxu0 %v118_v53  ;;  %382 = vmatprep.subr.mxu1 %v120_v54  ;;  %v567_v21 = vld [vmem:[#allocation9 + $0x190] sm:$0xff]  ;;  %v2332_v22 = vld [vmem:[#allocation3 + $0x20] sm:$0xff]  ;;  %v562_v23 = vld [vmem:[#allocation9 + $0x168] sm:$0xff] }
  0x5a   :  { %222 = vmatpush1.msra.mxu0 %v117_v55  ;;  %383 = vmatpush1.msra.mxu1 %v119_v56  ;;  %v564_v24 = vld [vmem:[#allocation9 + $0x178] sm:$0xff]  ;;  %v561_v25 = vld [vmem:[#allocation9 + $0x160] sm:$0xff]  ;;  %v563_v26 = vld [vmem:[#allocation9 + $0x170] sm:$0xff] }
  0x5b   :  { %223 = vmatprep.subr.mxu0 %v114_v57  ;;  %384 = vmatprep.subr.mxu1 %v116_v58  ;;  %v2338_v27 = vld [vmem:[#allocation3 + $0x28] sm:$0xff]  ;;  %v560_v29 = vld [vmem:[#allocation9 + $0x158] sm:$0xff]  ;;  %v559_v31 = vld [vmem:[#allocation9 + $0x150] sm:$0xff] }
  0x5c   :  { %224 = vmatpush1.msra.mxu0 %v113_v59  ;;  %385 = vmatpush1.msra.mxu1 %v115_v60  ;;  %v558_v28 = vld [vmem:[#allocation9 + $0x148] sm:$0xff]  ;;  %v557_v30 = vld [vmem:[#allocation9 + $0x140] sm:$0xff]  ;;  %v556_v34 = vld [vmem:[#allocation9 + $0x138] sm:$0xff] }
  0x5d   :  { %225 = vmatprep.subr.mxu0 %v110_v61  ;;  %386 = vmatprep.subr.mxu1 %v112_v62  ;;  %v2344_v32 = vld [vmem:[#allocation3 + $0x30] sm:$0xff]  ;;  %v553_v35 = vld [vmem:[#allocation9 + $0x120] sm:$0xff]  ;;  %v2350_v37 = vld [vmem:[#allocation3 + $0x38] sm:$0xff] }
  0x5e   :  { %226 = vmatpush1.msra.mxu0 %v109_v63  ;;  %387 = vmatpush1.msra.mxu1 %v111_v1  ;;  %v554_v33 = vld [vmem:[#allocation9 + $0x128] sm:$0xff]  ;;  %v555_v36 = vld [vmem:[#allocation9 + $0x130] sm:$0xff]  ;;  %v552_v39 = vld [vmem:[#allocation9 + $0x118] sm:$0xff] }
  0x5f   :  { %260 = vmatmul.mubr.f32.vlgmr.msra.gmra.mxu0 %v2310_v2  ;;  %421 = vmatmul.mubr.f32.vlgmr.msra.gmra.mxu1 %v2310_v2  ;;  %v550_v38 = vld [vmem:[#allocation9 + $0x108] sm:$0xff]  ;;  %v549_v40 = vld [vmem:[#allocation9 + $0x100] sm:$0xff]  ;;  %v551_v41 = vld [vmem:[#allocation9 + $0x110] sm:$0xff] }
  0x60   :  { %603 = vmatprep.subr.mxu0 %v578_v3  ;;  %764 = vmatprep.subr.mxu1 %v580_v4  ;;  %v2356_v42 = vld [vmem:[#allocation3 + $0x40] sm:$0xff]  ;;  %v546_v43 = vld [vmem:[#allocation9 + $0xe8] sm:$0xff]  ;;  %v547_v46 = vld [vmem:[#allocation9 + $0xf0] sm:$0xff] }
  0x61   :  { %604 = vmatpush1.msra.mxu0 %v577_v5  ;;  %765 = vmatpush1.msra.mxu1 %v579_v6  ;;  %v548_v44 = vld [vmem:[#allocation9 + $0xf8] sm:$0xff]  ;;  %v545_v45 = vld [vmem:[#allocation9 + $0xe0] sm:$0xff]  ;;  %v542_v48 = vld [vmem:[#allocation9 + $0xc8] sm:$0xff] }
  0x62   :  { %265 = vmatprep.mubr.f32.mxu0 %v2245_v0  ;;  %426 = vmatprep.mubr.f32.mxu1 %v2245_v0  ;;  %v2362_v47 = vld [vmem:[#allocation3 + $0x48] sm:$0xff]  ;;  %v544_v49 = vld [vmem:[#allocation9 + $0xd8] sm:$0xff]  ;;  %v543_v51 = vld [vmem:[#allocation9 + $0xd0] sm:$0xff] }
  0x63   :  { %266 = vmatmul.mubr.f32.gmra.mxu0 %v2314_v7  ;;  %427 = vmatmul.mubr.f32.gmra.mxu1 %v2314_v7  ;;  %v541_v50 = vld [vmem:[#allocation9 + $0xc0] sm:$0xff]  ;;  %v2368_v52 = vld [vmem:[#allocation3 + $0x50] sm:$0xff]  ;;  %v540_v54 = vld [vmem:[#allocation9 + $0xb8] sm:$0xff] }
  0x64   :  { %605 = vmatprep.subr.mxu0 %v574_v8  ;;  %766 = vmatprep.subr.mxu1 %v576_v9  ;;  %v538_v53 = vld [vmem:[#allocation9 + $0xa8] sm:$0xff]  ;;  %v537_v55 = vld [vmem:[#allocation9 + $0xa0] sm:$0xff]  ;;  %v539_v56 = vld [vmem:[#allocation9 + $0xb0] sm:$0xff] }
  0x65   :  { %606 = vmatpush1.msra.mxu0 %v573_v10  ;;  %767 = vmatpush1.msra.mxu1 %v575_v11  ;;  %v2374_v57 = vld [vmem:[#allocation3 + $0x58] sm:$0xff]  ;;  %v534_v58 = vld [vmem:[#allocation9 + $0x88] sm:$0xff]  ;;  %v533_v60 = vld [vmem:[#allocation9 + $0x80] sm:$0xff] }
  0x66   :  { %271 = vmatprep.mubr.f32.mxu0 %v2245_v0  ;;  %432 = vmatprep.mubr.f32.mxu1 %v2245_v0  ;;  %v536_v59 = vld [vmem:[#allocation9 + $0x98] sm:$0xff]  ;;  %v535_v61 = vld [vmem:[#allocation9 + $0x90] sm:$0xff]  ;;  %v530_v63 = vld [vmem:[#allocation9 + $0x68] sm:$0xff] }
  0x67   :  { %272 = vmatmul.mubr.f32.gmra.mxu0 %v2320_v12  ;;  %433 = vmatmul.mubr.f32.gmra.mxu1 %v2320_v12  ;;  %v2380_v62 = vld [vmem:[#allocation3 + $0x60] sm:$0xff]  ;;  %v531_v4 = vld [vmem:[#allocation9 + $0x70] sm:$0xff]  ;;  %v2386_v5 = vld [vmem:[#allocation3 + $0x68] sm:$0xff] }
  0x68   :  { %607 = vmatprep.subr.mxu0 %v570_v13  ;;  %768 = vmatprep.subr.mxu1 %v572_v14  ;;  %v532_v1 = vld [vmem:[#allocation9 + $0x78] sm:$0xff]  ;;  %v529_v3 = vld [vmem:[#allocation9 + $0x60] sm:$0xff]  ;;  %v526_v6 = vld [vmem:[#allocation9 + $0x48] sm:$0xff] }
  0x69   :  { %608 = vmatpush1.msra.mxu0 %v569_v15  ;;  %769 = vmatpush1.msra.mxu1 %v571_v16  ;;  %v528_v8 = vld [vmem:[#allocation9 + $0x58] sm:$0xff]  ;;  %v525_v9 = vld [vmem:[#allocation9 + $0x40] sm:$0xff]  ;;  %v527_v10 = vld [vmem:[#allocation9 + $0x50] sm:$0xff] }
  0x6a   :  { %277 = vmatprep.mubr.f32.mxu0 %v2245_v0  ;;  %438 = vmatprep.mubr.f32.mxu1 %v2245_v0  ;;  %v2392_v11 = vld [vmem:[#allocation3 + $0x70] sm:$0xff]  ;;  %v524_v14 = vld [vmem:[#allocation9 + $0x38] sm:$0xff]  ;;  %v521_v15 = vld [vmem:[#allocation9 + $0x20] sm:$0xff] }
  0x6b   :  { %278 = vmatmul.mubr.f32.gmra.mxu0 %v2326_v17  ;;  %439 = vmatmul.mubr.f32.gmra.mxu1 %v2326_v17  ;;  %v522_v13 = vld [vmem:[#allocation9 + $0x28] sm:$0xff]  ;;  %v523_v16 = vld [vmem:[#allocation9 + $0x30] sm:$0xff] }
  0x6c   :  { %609 = vmatprep.subr.mxu0 %v566_v18  ;;  %770 = vmatprep.subr.mxu1 %v568_v19  ;;  %v2398_v18 = vld [vmem:[#allocation3 + $0x78] sm:$0xff]  ;;  %v518_v19 = vld [vmem:[#allocation9 + $0x8] sm:$0xff] }
  0x6d   :  { %610 = vmatpush1.msra.mxu0 %v565_v20  ;;  %771 = vmatpush1.msra.mxu1 %v567_v21  ;;  %v520_v20 = vld [vmem:[#allocation9 + $0x18] sm:$0xff]  ;;  %v517_v21 = vld [vmem:[#allocation9] sm:$0xff] }
  0x6e   :  { %283 = vmatprep.mubr.f32.mxu0 %v2245_v0  ;;  %444 = vmatprep.mubr.f32.mxu1 %v2245_v0 }
  0x6f   :  { %284 = vmatmul.mubr.f32.gmra.mxu0 %v2332_v22  ;;  %445 = vmatmul.mubr.f32.gmra.mxu1 %v2332_v22 }
  0x70   :  { %611 = vmatprep.subr.mxu0 %v562_v23  ;;  %772 = vmatprep.subr.mxu1 %v564_v24  ;;  %v519_v23 = vld [vmem:[#allocation9 + $0x10] sm:$0xff] }
  0x71   :  { %612 = vmatpush1.msra.mxu0 %v561_v25  ;;  %773 = vmatpush1.msra.mxu1 %v563_v26  ;;  %v1371_v24 = vld [vmem:[#allocation11 + $0x1f0] sm:$0xff] }
  0x72   :  { %289 = vmatprep.mubr.f32.mxu0 %v2245_v0  ;;  %450 = vmatprep.mubr.f32.mxu1 %v2245_v0  ;;  %v1323_v25 = vld [vmem:[#allocation11 + $0x70] sm:$0xff] }
  0x73   :  { %290 = vmatmul.mubr.f32.gmra.mxu0 %v2338_v27  ;;  %451 = vmatmul.mubr.f32.gmra.mxu1 %v2338_v27  ;;  %v1355_v26 = vld [vmem:[#allocation11 + $0x170] sm:$0xff] }
  0x74   :  { %613 = vmatprep.subr.mxu0 %v558_v28  ;;  %774 = vmatprep.subr.mxu1 %v560_v29  ;;  %v1370_v28 = vld [vmem:[#allocation11 + $0x1e8] sm:$0xff] }
  0x75   :  { %614 = vmatpush1.msra.mxu0 %v557_v30  ;;  %775 = vmatpush1.msra.mxu1 %v559_v31  ;;  %v1322_v29 = vld [vmem:[#allocation11 + $0x68] sm:$0xff]  ;;  %v1337_v31 = vld [vmem:[#allocation11 + $0xe0] sm:$0xff] }
  0x76   :  { %295 = vmatprep.mubr.f32.mxu0 %v2245_v0  ;;  %456 = vmatprep.mubr.f32.mxu1 %v2245_v0  ;;  %v1354_v30 = vld [vmem:[#allocation11 + $0x168] sm:$0xff] }
  0x77   :  { %296 = vmatmul.mubr.f32.gmra.mxu0 %v2344_v32  ;;  %457 = vmatmul.mubr.f32.gmra.mxu1 %v2344_v32 }
  0x78   :  { %615 = vmatprep.subr.mxu0 %v554_v33  ;;  %776 = vmatprep.subr.mxu1 %v556_v34  ;;  %v1321_v33 = vld [vmem:[#allocation11 + $0x60] sm:$0xff] }
  0x79   :  { %616 = vmatpush1.msra.mxu0 %v553_v35  ;;  %777 = vmatpush1.msra.mxu1 %v555_v36  ;;  %v1353_v34 = vld [vmem:[#allocation11 + $0x160] sm:$0xff]  ;;  %v1336_v35 = vld [vmem:[#allocation11 + $0xd8] sm:$0xff] }
  0x7a   :  { %301 = vmatprep.mubr.f32.mxu0 %v2245_v0  ;;  %462 = vmatprep.mubr.f32.mxu1 %v2245_v0  ;;  %v1368_v36 = vld [vmem:[#allocation11 + $0x1d8] sm:$0xff] }
  0x7b   :  { %302 = vmatmul.mubr.f32.gmra.mxu0 %v2350_v37  ;;  %463 = vmatmul.mubr.f32.gmra.mxu1 %v2350_v37 }
  0x7c   :  { %617 = vmatprep.subr.mxu0 %v550_v38  ;;  %778 = vmatprep.subr.mxu1 %v552_v39  ;;  %v1352_v38 = vld [vmem:[#allocation11 + $0x158] sm:$0xff]  ;;  %v1335_v39 = vld [vmem:[#allocation11 + $0xd0] sm:$0xff] }
  0x7d   :  { %618 = vmatpush1.msra.mxu0 %v549_v40  ;;  %779 = vmatpush1.msra.mxu1 %v551_v41  ;;  %v1367_v40 = vld [vmem:[#allocation11 + $0x1d0] sm:$0xff] }
  0x7e   :  { %307 = vmatprep.mubr.f32.mxu0 %v2245_v0  ;;  %468 = vmatprep.mubr.f32.mxu1 %v2245_v0  ;;  %v1319_v41 = vld [vmem:[#allocation11 + $0x50] sm:$0xff] }
  0x7f   :  { %308 = vmatmul.mubr.f32.gmra.mxu0 %v2356_v42  ;;  %469 = vmatmul.mubr.f32.gmra.mxu1 %v2356_v42 }
  0x80   :  { %619 = vmatprep.subr.mxu0 %v546_v43  ;;  %780 = vmatprep.subr.mxu1 %v548_v44  ;;  %v1334_v43 = vld [vmem:[#allocation11 + $0xc8] sm:$0xff] }
  0x81   :  { %620 = vmatpush1.msra.mxu0 %v545_v45  ;;  %781 = vmatpush1.msra.mxu1 %v547_v46  ;;  %v1366_v44 = vld [vmem:[#allocation11 + $0x1c8] sm:$0xff] }
  0x82   :  { %313 = vmatprep.mubr.f32.mxu0 %v2245_v0  ;;  %474 = vmatprep.mubr.f32.mxu1 %v2245_v0  ;;  %v1318_v45 = vld [vmem:[#allocation11 + $0x48] sm:$0xff] }
  0x83   :  { %314 = vmatmul.mubr.f32.gmra.mxu0 %v2362_v47  ;;  %475 = vmatmul.mubr.f32.gmra.mxu1 %v2362_v47  ;;  %v1350_v46 = vld [vmem:[#allocation11 + $0x148] sm:$0xff] }
  0x84   :  { %621 = vmatprep.subr.mxu0 %v542_v48  ;;  %782 = vmatprep.subr.mxu1 %v544_v49  ;;  %v1365_v48 = vld [vmem:[#allocation11 + $0x1c0] sm:$0xff] }
  0x85   :  { %622 = vmatpush1.msra.mxu0 %v541_v50  ;;  %783 = vmatpush1.msra.mxu1 %v543_v51  ;;  %v1317_v49 = vld [vmem:[#allocation11 + $0x40] sm:$0xff]  ;;  %v1332_v51 = vld [vmem:[#allocation11 + $0xb8] sm:$0xff] }
  0x86   :  { %319 = vmatprep.mubr.f32.mxu0 %v2245_v0  ;;  %480 = vmatprep.mubr.f32.mxu1 %v2245_v0  ;;  %v1349_v50 = vld [vmem:[#allocation11 + $0x140] sm:$0xff] }
  0x87   :  { %320 = vmatmul.mubr.f32.gmra.mxu0 %v2368_v52  ;;  %481 = vmatmul.mubr.f32.gmra.mxu1 %v2368_v52 }
  0x88   :  { %623 = vmatprep.subr.mxu0 %v538_v53  ;;  %784 = vmatprep.subr.mxu1 %v540_v54  ;;  %v1316_v53 = vld [vmem:[#allocation11 + $0x38] sm:$0xff] }
  0x89   :  { %624 = vmatpush1.msra.mxu0 %v537_v55  ;;  %785 = vmatpush1.msra.mxu1 %v539_v56  ;;  %v1348_v54 = vld [vmem:[#allocation11 + $0x138] sm:$0xff]  ;;  %v1363_v55 = vld [vmem:[#allocation11 + $0x1b0] sm:$0xff] }
  0x8a   :  { %325 = vmatprep.mubr.f32.mxu0 %v2245_v0  ;;  %486 = vmatprep.mubr.f32.mxu1 %v2245_v0  ;;  %v1315_v56 = vld [vmem:[#allocation11 + $0x30] sm:$0xff] }
  0x8b   :  { %326 = vmatmul.mubr.f32.gmra.mxu0 %v2374_v57  ;;  %487 = vmatmul.mubr.f32.gmra.mxu1 %v2374_v57 }
  0x8c   :  { %625 = vmatprep.subr.mxu0 %v534_v58  ;;  %786 = vmatprep.subr.mxu1 %v536_v59  ;;  %v1330_v58 = vld [vmem:[#allocation11 + $0xa8] sm:$0xff] }
  0x8d   :  { %626 = vmatpush1.msra.mxu0 %v533_v60  ;;  %787 = vmatpush1.msra.mxu1 %v535_v61  ;;  %v1362_v59 = vld [vmem:[#allocation11 + $0x1a8] sm:$0xff] }
  0x8e   :  { %331 = vmatprep.mubr.f32.mxu0 %v2245_v0  ;;  %492 = vmatprep.mubr.f32.mxu1 %v2245_v0  ;;  %v1314_v60 = vld [vmem:[#allocation11 + $0x28] sm:$0xff] }
  0x8f   :  { %332 = vmatmul.mubr.f32.gmra.mxu0 %v2380_v62  ;;  %493 = vmatmul.mubr.f32.gmra.mxu1 %v2380_v62  ;;  %v1346_v61 = vld [vmem:[#allocation11 + $0x128] sm:$0xff] }
  0x90   :  { %627 = vmatprep.subr.mxu0 %v530_v63  ;;  %788 = vmatprep.subr.mxu1 %v532_v1  ;;  %v1361_v63 = vld [vmem:[#allocation11 + $0x1a0] sm:$0xff] }
  0x91   :  { %628 = vmatpush1.msra.mxu0 %v529_v3  ;;  %789 = vmatpush1.msra.mxu1 %v531_v4  ;;  %v1313_v1 = vld [vmem:[#allocation11 + $0x20] sm:$0xff]  ;;  %v1328_v4 = vld [vmem:[#allocation11 + $0x98] sm:$0xff] }
  0x92   :  { %337 = vmatprep.mubr.f32.mxu0 %v2245_v0  ;;  %498 = vmatprep.mubr.f32.mxu1 %v2245_v0  ;;  %v1345_v3 = vld [vmem:[#allocation11 + $0x120] sm:$0xff] }
  0x93   :  { %338 = vmatmul.mubr.f32.gmra.mxu0 %v2386_v5  ;;  %499 = vmatmul.mubr.f32.gmra.mxu1 %v2386_v5 }
  0x94   :  { %629 = vmatprep.subr.mxu0 %v526_v6  ;;  %790 = vmatprep.subr.mxu1 %v528_v8  ;;  %v1312_v6 = vld [vmem:[#allocation11 + $0x18] sm:$0xff] }
  0x95   :  { %630 = vmatpush1.msra.mxu0 %v525_v9  ;;  %791 = vmatpush1.msra.mxu1 %v527_v10  ;;  %v1344_v8 = vld [vmem:[#allocation11 + $0x118] sm:$0xff]  ;;  %v1327_v9 = vld [vmem:[#allocation11 + $0x90] sm:$0xff] }
  0x96   :  { %343 = vmatprep.mubr.f32.mxu0 %v2245_v0  ;;  %504 = vmatprep.mubr.f32.mxu1 %v2245_v0  ;;  %v1359_v10 = vld [vmem:[#allocation11 + $0x190] sm:$0xff] }
  0x97   :  { %344 = vmatmul.mubr.f32.gmra.mxu0 %v2392_v11  ;;  %505 = vmatmul.mubr.f32.gmra.mxu1 %v2392_v11 }
  0x98   :  { %631 = vmatprep.subr.mxu0 %v522_v13  ;;  %792 = vmatprep.subr.mxu1 %v524_v14  ;;  %v1343_v13 = vld [vmem:[#allocation11 + $0x110] sm:$0xff]  ;;  %v1326_v14 = vld [vmem:[#allocation11 + $0x88] sm:$0xff] }
  0x99   :  { %632 = vmatpush1.msra.mxu0 %v521_v15  ;;  %793 = vmatpush1.msra.mxu1 %v523_v16  ;;  %v1358_v15 = vld [vmem:[#allocation11 + $0x188] sm:$0xff] }
  0x9a   :  { %349 = vmatprep.mubr.f32.mxu0 %v2245_v0  ;;  %510 = vmatprep.mubr.f32.mxu1 %v2245_v0  ;;  %v1310_v16 = vld [vmem:[#allocation11 + $0x8] sm:$0xff] }
  0x9b   :  { %350 = vmatmul.mubr.f32.gmra.mxu0 %v2398_v18  ;;  %511 = vmatmul.mubr.f32.gmra.mxu1 %v2398_v18 }
  0x9c   :  { %633 = vmatprep.subr.mxu0 %v518_v19  ;;  %794 = vmatprep.subr.mxu1 %v520_v20  ;;  %v1325_v19 = vld [vmem:[#allocation11 + $0x80] sm:$0xff] }
  0x9d   :  { %634 = vmatpush1.msra.mxu0 %v517_v21  ;;  %795 = vmatpush1.msra.mxu1 %v519_v23  ;;  %v1357_v20 = vld [vmem:[#allocation11 + $0x180] sm:$0xff] }
  0x9e   :  { %667 = vmatprep.mubr.f32.mxu0 %v2245_v0  ;;  %828 = vmatprep.mubr.f32.mxu1 %v2245_v0  ;;  %v1309_v21 = vld [vmem:[#allocation11] sm:$0xff] }
  0x9f   :  { %668 = vmatmul.mubr.f32.vlgmr.msra.gmra.mxu0 %v2310_v2  ;;  %829 = vmatmul.mubr.f32.vlgmr.msra.gmra.mxu1 %v2310_v2  ;;  %v1340_v2 = vld [vmem:[#allocation11 + $0xf8] sm:$0xff]  ;;  %v1341_v23 = vld [vmem:[#allocation11 + $0x100] sm:$0xff] }
  0xa0   :  { %673 = vmatprep.mubr.f32.mxu0 %v2245_v0  ;;  %834 = vmatprep.mubr.f32.mxu1 %v2245_v0 }
  0xa1   :  { %1809 = vmatprep.subr.mxu0 %v1340_v2 }
  0xa3   :  { %674 = vmatmul.mubr.f32.gmra.mxu0 %v2314_v7  ;;  %835 = vmatmul.mubr.f32.gmra.mxu1 %v2314_v7  ;;  %v1372_v7 = vld [vmem:[#allocation11 + $0x1f8] sm:$0xff] }
  0xa4   :  { %679 = vmatprep.mubr.f32.mxu0 %v2245_v0  ;;  %840 = vmatprep.mubr.f32.mxu1 %v2245_v0 }
  0xa5   :  { %1889 = vmatprep.subr.mxu1 %v1372_v7 }
  0xa7   :  { %680 = vmatmul.mubr.f32.gmra.mxu0 %v2320_v12  ;;  %841 = vmatmul.mubr.f32.gmra.mxu1 %v2320_v12  ;;  %v1324_v12 = vld [vmem:[#allocation11 + $0x78] sm:$0xff] }
  0xa8   :  { %685 = vmatprep.mubr.f32.mxu0 %v2245_v0  ;;  %846 = vmatprep.mubr.f32.mxu1 %v2245_v0 }
  0xa9   :  { %1810 = vmatpush3.msra.mxu0 %v1324_v12 }
  0xab   :  { %686 = vmatmul.mubr.f32.gmra.mxu0 %v2326_v17  ;;  %847 = vmatmul.mubr.f32.gmra.mxu1 %v2326_v17  ;;  %v1356_v17 = vld [vmem:[#allocation11 + $0x178] sm:$0xff] }
  0xac   :  { %691 = vmatprep.mubr.f32.mxu0 %v2245_v0  ;;  %852 = vmatprep.mubr.f32.mxu1 %v2245_v0 }
  0xad   :  { %1890 = vmatpush3.msra.mxu1 %v1356_v17 }
  0xae   :  { %1891 = vmatprep.subr.mxu1 %v1371_v24 }
  0xaf   :  { %692 = vmatmul.mubr.f32.gmra.mxu0 %v2332_v22  ;;  %853 = vmatmul.mubr.f32.gmra.mxu1 %v2332_v22  ;;  %v1339_v22 = vld [vmem:[#allocation11 + $0xf0] sm:$0xff] }
  0xb0   :  { %697 = vmatprep.mubr.f32.mxu0 %v2245_v0  ;;  %858 = vmatprep.mubr.f32.mxu1 %v2245_v0 }
  0xb1   :  { %1811 = vmatprep.subr.mxu0 %v1339_v22  ;;  %1892 = vmatpush3.msra.mxu1 %v1355_v26 }
  0xb2   :  { %1812 = vmatpush3.msra.mxu0 %v1323_v25  ;;  %1893 = vmatprep.subr.mxu1 %v1370_v28 }
  0xb3   :  { %698 = vmatmul.mubr.f32.gmra.mxu0 %v2338_v27  ;;  %859 = vmatmul.mubr.f32.gmra.mxu1 %v2338_v27  ;;  %v1338_v27 = vld [vmem:[#allocation11 + $0xe8] sm:$0xff] }
  0xb4   :  { %703 = vmatprep.mubr.f32.mxu0 %v2245_v0  ;;  %864 = vmatprep.mubr.f32.mxu1 %v2245_v0 }
  0xb5   :  { %1813 = vmatprep.subr.mxu0 %v1338_v27  ;;  %1894 = vmatpush3.msra.mxu1 %v1354_v30 }
  0xb6   :  { %1814 = vmatpush3.msra.mxu0 %v1322_v29 }
  0xb7   :  { %704 = vmatmul.mubr.f32.gmra.mxu0 %v2344_v32  ;;  %865 = vmatmul.mubr.f32.gmra.mxu1 %v2344_v32  ;;  %v1369_v32 = vld [vmem:[#allocation11 + $0x1e0] sm:$0xff] }
  0xb8   :  { %709 = vmatprep.mubr.f32.mxu0 %v2245_v0  ;;  %870 = vmatprep.mubr.f32.mxu1 %v2245_v0 }
  0xb9   :  { %1815 = vmatprep.subr.mxu0 %v1337_v31  ;;  %1895 = vmatprep.subr.mxu1 %v1369_v32 }
  0xba   :  { %1816 = vmatpush3.msra.mxu0 %v1321_v33  ;;  %1896 = vmatpush3.msra.mxu1 %v1353_v34 }
  0xbb   :  { %710 = vmatmul.mubr.f32.gmra.mxu0 %v2350_v37  ;;  %871 = vmatmul.mubr.f32.gmra.mxu1 %v2350_v37  ;;  %v1320_v37 = vld [vmem:[#allocation11 + $0x58] sm:$0xff] }
  0xbc   :  { %715 = vmatprep.mubr.f32.mxu0 %v2245_v0  ;;  %876 = vmatprep.mubr.f32.mxu1 %v2245_v0 }
  0xbd   :  { %1817 = vmatprep.subr.mxu0 %v1336_v35  ;;  %1897 = vmatprep.subr.mxu1 %v1368_v36 }
  0xbe   :  { %1818 = vmatpush3.msra.mxu0 %v1320_v37  ;;  %1898 = vmatpush3.msra.mxu1 %v1352_v38 }
  0xbf   :  { %716 = vmatmul.mubr.f32.gmra.mxu0 %v2356_v42  ;;  %877 = vmatmul.mubr.f32.gmra.mxu1 %v2356_v42  ;;  %v1351_v42 = vld [vmem:[#allocation11 + $0x150] sm:$0xff] }
  0xc0   :  { %721 = vmatprep.mubr.f32.mxu0 %v2245_v0  ;;  %882 = vmatprep.mubr.f32.mxu1 %v2245_v0 }
  0xc1   :  { %1819 = vmatprep.subr.mxu0 %v1335_v39  ;;  %1899 = vmatprep.subr.mxu1 %v1367_v40 }
  0xc2   :  { %1820 = vmatpush3.msra.mxu0 %v1319_v41  ;;  %1900 = vmatpush3.msra.mxu1 %v1351_v42 }
  0xc3   :  { %722 = vmatmul.mubr.f32.gmra.mxu0 %v2362_v47  ;;  %883 = vmatmul.mubr.f32.gmra.mxu1 %v2362_v47  ;;  %v1333_v47 = vld [vmem:[#allocation11 + $0xc0] sm:$0xff] }
  0xc4   :  { %727 = vmatprep.mubr.f32.mxu0 %v2245_v0  ;;  %888 = vmatprep.mubr.f32.mxu1 %v2245_v0 }
  0xc5   :  { %1821 = vmatprep.subr.mxu0 %v1334_v43  ;;  %1901 = vmatprep.subr.mxu1 %v1366_v44  ;;  %v175_v43 = vlaneseq }
  0xc6   :  { %1822 = vmatpush3.msra.mxu0 %v1318_v45  ;;  %1902 = vmatpush3.msra.mxu1 %v1350_v46 }
  0xc7   :  { %728 = vmatmul.mubr.f32.gmra.mxu0 %v2368_v52  ;;  %889 = vmatmul.mubr.f32.gmra.mxu1 %v2368_v52  ;;  %v1364_v52 = vld [vmem:[#allocation11 + $0x1b8] sm:$0xff] }
  0xc8   :  { %733 = vmatprep.mubr.f32.mxu0 %v2245_v0  ;;  %894 = vmatprep.mubr.f32.mxu1 %v2245_v0 }
  0xc9   :  { %1823 = vmatprep.subr.mxu0 %v1333_v47  ;;  %1903 = vmatprep.subr.mxu1 %v1365_v48  ;;  %v2524_v48 = vshrl.u32 %v175_v43, 7 }
  0xca   :  { %1824 = vmatpush3.msra.mxu0 %v1317_v49  ;;  %1904 = vmatpush3.msra.mxu1 %v1349_v50 }
  0xcb   :  { %734 = vmatmul.mubr.f32.gmra.mxu0 %v2374_v57  ;;  %895 = vmatmul.mubr.f32.gmra.mxu1 %v2374_v57  ;;  %v1347_v57 = vld [vmem:[#allocation11 + $0x130] sm:$0xff] }
  0xcc   :  { %739 = vmatprep.mubr.f32.mxu0 %v2245_v0  ;;  %900 = vmatprep.mubr.f32.mxu1 %v2245_v0 }
  0xcd   :  { %1825 = vmatprep.subr.mxu0 %v1332_v51  ;;  %1905 = vmatprep.subr.mxu1 %v1364_v52 }
  0xce   :  { %1826 = vmatpush3.msra.mxu0 %v1316_v53  ;;  %1906 = vmatpush3.msra.mxu1 %v1348_v54  ;;  %v3437_v53 = vsub.s32 0, %v2524_v48  ;;  %v3436_v54 = vsub.s32 2, %v2524_v48 }
  0xcf   :  { %740 = vmatmul.mubr.f32.gmra.mxu0 %v2380_v62  ;;  %901 = vmatmul.mubr.f32.gmra.mxu1 %v2380_v62  ;;  %v1329_v62 = vld [vmem:[#allocation11 + $0xa0] sm:$0xff] }
  0xd0   :  { %745 = vmatprep.mubr.f32.mxu0 %v2245_v0  ;;  %906 = vmatprep.mubr.f32.mxu1 %v2245_v0 }
  0xd1   :  { %1907 = vmatprep.subr.mxu1 %v1363_v55 }
  0xd2   :  { %1908 = vmatpush3.msra.mxu1 %v1347_v57  ;;  %v3435_v57 = vsub.s32 3, %v2524_v48 }
  0xd3   :  { %746 = vmatmul.mubr.f32.gmra.mxu0 %v2386_v5  ;;  %907 = vmatmul.mubr.f32.gmra.mxu1 %v2386_v5  ;;  %v1360_v5 = vld [vmem:[#allocation11 + $0x198] sm:$0xff] }
  0xd4   :  { %751 = vmatprep.mubr.f32.mxu0 %v2245_v0  ;;  %912 = vmatprep.mubr.f32.mxu1 %v2245_v0 }
  0xd5   :  { %1909 = vmatprep.subr.mxu1 %v1362_v59 }
  0xd6   :  { %1910 = vmatpush3.msra.mxu1 %v1346_v61 }
  0xd7   :  { %752 = vmatmul.mubr.f32.gmra.mxu0 %v2392_v11  ;;  %913 = vmatmul.mubr.f32.gmra.mxu1 %v2392_v11  ;;  %v1311_v11 = vld [vmem:[#allocation11 + $0x10] sm:$0xff] }
  0xd8   :  { %757 = vmatprep.mubr.f32.mxu0 %v2245_v0  ;;  %918 = vmatprep.mubr.f32.mxu1 %v2245_v0  ;;  %v1331_v0 = vld [vmem:[#allocation11 + $0xb0] sm:$0xff] }
  0xd9   :  { %1827 = vmatprep.subr.mxu0 %v1331_v0  ;;  %1911 = vmatprep.subr.mxu1 %v1361_v63  ;;  %v173_v0 = vld [vmem:[#allocation8] sm:$0xf] }
  0xda   :  { %1828 = vmatpush3.msra.mxu0 %v1315_v56  ;;  %1912 = vmatpush3.msra.mxu1 %v1345_v3  ;;  %v2551_v61 = vrot.slane %v173_v0, %v3436_v54  ;;  %v2556_v3 = vrot.slane %v173_v0, %v3435_v57 }
  0xdb   :  { %758 = vmatmul.mubr.f32.gmra.mxu0 %v2398_v18  ;;  %919 = vmatmul.mubr.f32.gmra.mxu1 %v2398_v18  ;;  %v1342_v18 = vld [vmem:[#allocation11 + $0x108] sm:$0xff] }
  0xdc   :  { %1829 = vmatprep.subr.mxu0 %v1330_v58  ;;  %1913 = vmatprep.subr.mxu1 %v1360_v5 }
  0xdd   :  { %1830 = vmatpush3.msra.mxu0 %v1314_v60  ;;  %1914 = vmatpush3.msra.mxu1 %v1344_v8  ;;  %v2547_v60 = vrot.slane %v173_v0, %v3437_v53 }
  0xde   :  { %1831 = vmatprep.subr.mxu0 %v1329_v62  ;;  %1915 = vmatprep.subr.mxu1 %v1359_v10 }
  0xdf   :  { %1832 = vmatpush3.msra.mxu0 %v1313_v1  ;;  %1916 = vmatpush3.msra.mxu1 %v1343_v13  ;;  %v181_v1 = vsub.s32 1, %v2524_v48 }
  0xe0   :  { %1833 = vmatprep.subr.mxu0 %v1328_v4  ;;  %1917 = vmatprep.subr.mxu1 %v1358_v15 }
  0xe1   :  { %1834 = vmatpush3.msra.mxu0 %v1312_v6  ;;  %1918 = vmatpush3.msra.mxu1 %v1342_v18  ;;  %v2569_v13 = vrot.slane %v173_v0, %v181_v1 }
  0xe2   :  { %1835 = vmatprep.subr.mxu0 %v1327_v9  ;;  %1919 = vmatprep.subr.mxu1 %v1357_v20 }
  0xe3   :  { %1836 = vmatpush3.msra.mxu0 %v1311_v11  ;;  %1920 = vmatpush3.msra.mxu1 %v1341_v23 }
  0xe4   :  { %1837 = vmatprep.subr.mxu0 %v1326_v14 }
  0xe5   :  { %1838 = vmatpush3.msra.mxu0 %v1310_v16 }
  0xe6   :  { %1839 = vmatprep.subr.mxu0 %v1325_v19 }
  0xe7   :  { %1840 = vmatpush3.msra.mxu0 %v1309_v21 }
 0x11f   :  { %v2468_v2 = vpop.f32.mrf.mxu0  ;;  %v2470_v7 = vpop.f32.mrf.mxu1 }
 0x121   :  { %v2472_v12 = vpop.f32.mrf.mxu0  ;;  %v2474_v17 = vpop.f32.mrf.mxu1 }
 0x123   :  { %v2476_v22 = vpop.f32.mrf.mxu0  ;;  %v2478_v24 = vpop.f32.mrf.mxu1 }
 0x125   :  { %v2480_v25 = vpop.f32.mrf.mxu0  ;;  %v2482_v26 = vpop.f32.mrf.mxu1 }
 0x127   :  { %v2484_v27 = vpop.f32.mrf.mxu0  ;;  %v2486_v28 = vpop.f32.mrf.mxu1 }
 0x129   :  { %v2488_v29 = vpop.f32.mrf.mxu0  ;;  %v2490_v30 = vpop.f32.mrf.mxu1 }
 0x12b   :  { %v2492_v31 = vpop.f32.mrf.mxu0  ;;  %v2494_v32 = vpop.f32.mrf.mxu1 }
 0x12d   :  { %v2496_v33 = vpop.f32.mrf.mxu0  ;;  %v2498_v34 = vpop.f32.mrf.mxu1 }
 0x12f   :  { %v2500_v35 = vpop.f32.mrf.mxu0  ;;  %v2502_v36 = vpop.f32.mrf.mxu1 }
 0x131   :  { %v2504_v37 = vpop.f32.mrf.mxu0  ;;  %v2506_v38 = vpop.f32.mrf.mxu1 }
 0x133   :  { %v2508_v39 = vpop.f32.mrf.mxu0  ;;  %v2510_v40 = vpop.f32.mrf.mxu1 }
 0x135   :  { %v2512_v41 = vpop.f32.mrf.mxu0  ;;  %v2514_v42 = vpop.f32.mrf.mxu1 }
 0x137   :  { %v2516_v44 = vpop.f32.mrf.mxu0  ;;  %v2518_v45 = vpop.f32.mrf.mxu1 }
 0x139   :  { %v2520_v46 = vpop.f32.mrf.mxu0  ;;  %v2522_v47 = vpop.f32.mrf.mxu1 }
 0x13b   :  { %v2526_v49 = vpop.f32.mrf.mxu0  ;;  %v2528_v50 = vpop.f32.mrf.mxu1 }
 0x13d   :  { %v2530_v51 = vpop.f32.mrf.mxu0  ;;  %v2532_v52 = vpop.f32.mrf.mxu1 }
 0x13f   :  { %v2536_v55 = vpop.f32.mrf.mxu0  ;;  %v2538_v56 = vpop.f32.mrf.mxu1 }
 0x141   :  { %v2541_v58 = vpop.f32.mrf.mxu0  ;;  %v2543_v59 = vpop.f32.mrf.mxu1 }
 0x143   :  { %v315_v62 = vpop.f32.mrf.mxu0  ;;  %v476_v63 = vpop.f32.mrf.mxu1 }
 0x144   :  { %v2559_v4 = vadd.f32 %v315_v62, %v2547_v60  ;;  %v2562_v5 = vadd.f32 %v476_v63, %v2551_v61 }
 0x145   :  { %v2564_v6 = vpop.f32.mrf.mxu0  ;;  %v478_v8 = vpop.f32.mrf.mxu1 }
 0x146   :  { %3438 = vst [vmem:[#allocation17_spill] sm:$0xff] %v2559_v4  ;;  %3439 = vst [vmem:[#allocation18_spill] sm:$0xff] %v2562_v5  ;;  %v2567_v9 = vadd.f32 %v478_v8, %v2556_v3  ;;  %v2750_v4 = vadd.f32 %v2500_v35, %v2547_v60 }
 0x147   :  { %v321_v10 = vpop.f32.mrf.mxu0  ;;  %v482_v11 = vpop.f32.mrf.mxu1 }
 0x148   :  { %3440 = vst [vmem:[#allocation19_spill] sm:$0xff] %v2567_v9  ;;  %v2572_v14 = vadd.f32 %v321_v10, %v2547_v60  ;;  %v2575_v15 = vadd.f32 %v482_v11, %v2551_v61  ;;  %3474 = vst [vmem:[#allocation50_spill] sm:$0xff] %v2750_v4 }
 0x149   :  { %v323_v16 = vpop.f32.mrf.mxu0  ;;  %v484_v18 = vpop.f32.mrf.mxu1 }
 0x14a   :  { %3441 = vst [vmem:[#allocation20_spill] sm:$0xff] %v2572_v14  ;;  %3442 = vst [vmem:[#allocation21_spill] sm:$0xff] %v2575_v15  ;;  %v2578_v19 = vadd.f32 %v323_v16, %v2569_v13  ;;  %v2581_v20 = vadd.f32 %v484_v18, %v2556_v3  ;;  %v2712_v14 = vadd.f32 %v2486_v28, %v2551_v61 }
 0x14b   :  { %v327_v21 = vpop.f32.mrf.mxu0  ;;  %v488_v23 = vpop.f32.mrf.mxu1  ;;  %v2731_v28 = vadd.f32 %v2494_v32, %v2551_v61 }
 0x14c   :  { %3443 = vst [vmem:[#allocation22_spill] sm:$0xff] %v2578_v19  ;;  %3444 = vst [vmem:[#allocation23_spill] sm:$0xff] %v2581_v20  ;;  %v2584_v43 = vadd.f32 %v327_v21, %v2547_v60  ;;  %v2587_v0 = vadd.f32 %v488_v23, %v2551_v61 }
 0x14d   :  { %v329_v62 = vpop.f32.mrf.mxu0  ;;  %v490_v63 = vpop.f32.mrf.mxu1  ;;  %3469 = vst [vmem:[#allocation45_spill] sm:$0xff] %v2712_v14  ;;  %3471 = vst [vmem:[#allocation47_spill] sm:$0xff] %v2731_v28 }
 0x14e   :  { %3445 = vst [vmem:[#allocation24_spill] sm:$0xff] %v2584_v43  ;;  %3446 = vst [vmem:[#allocation25_spill] sm:$0xff] %v2587_v0  ;;  %v2590_v8 = vadd.f32 %v329_v62, %v2569_v13  ;;  %v2593_v10 = vadd.f32 %v490_v63, %v2556_v3 }
 0x14f   :  { %v333_v11 = vpop.f32.mrf.mxu0  ;;  %v494_v16 = vpop.f32.mrf.mxu1 }
 0x150   :  { %3447 = vst [vmem:[#allocation26_spill] sm:$0xff] %v2590_v8  ;;  %3448 = vst [vmem:[#allocation27_spill] sm:$0xff] %v2593_v10  ;;  %v2596_v18 = vadd.f32 %v333_v11, %v2547_v60  ;;  %v2599_v57 = vadd.f32 %v494_v16, %v2551_v61 }
 0x151   :  { %v335_v21 = vpop.f32.mrf.mxu0  ;;  %v496_v54 = vpop.f32.mrf.mxu1 }
 0x152   :  { %3449 = vst [vmem:[#allocation28_spill] sm:$0xff] %v2596_v18  ;;  %3450 = vst [vmem:[#allocation29_spill] sm:$0xff] %v2599_v57  ;;  %v2602_v23 = vadd.f32 %v335_v21, %v2569_v13  ;;  %v2605_v53 = vadd.f32 %v496_v54, %v2556_v3 }
 0x153   :  { %v339_v62 = vpop.f32.mrf.mxu0  ;;  %v500_v0 = vpop.f32.mrf.mxu1 }
 0x154   :  { %3451 = vst [vmem:[#allocation30_spill] sm:$0xff] %v2602_v23  ;;  %3452 = vst [vmem:[#allocation31_spill] sm:$0xff] %v2605_v53  ;;  %v2608_v63 = vadd.f32 %v339_v62, %v2547_v60  ;;  %v2611_v43 = vadd.f32 %v500_v0, %v2551_v61  ;;  %v581_v0 = vld [vmem:[%s3431_s4] sm:$0xf] }
 0x155   :  { %v341_v11 = vpop.f32.mrf.mxu0  ;;  %v502_v18 = vpop.f32.mrf.mxu1 }
 0x156   :  { %3453 = vst [vmem:[#allocation32_spill] sm:$0xff] %v2608_v63  ;;  %3454 = vst [vmem:[#allocation33_spill] sm:$0xff] %v2611_v43  ;;  %v2614_v16 = vadd.f32 %v341_v11, %v2569_v13  ;;  %v2617_v57 = vadd.f32 %v502_v18, %v2556_v3 }
 0x157   :  { %v345_v21 = vpop.f32.mrf.mxu0  ;;  %v506_v23 = vpop.f32.mrf.mxu1 }
 0x158   :  { %3455 = vst [vmem:[#allocation34_spill] sm:$0xff] %v2614_v16  ;;  %3456 = vst [vmem:[#allocation35_spill] sm:$0xff] %v2617_v57  ;;  %v2620_v54 = vadd.f32 %v345_v21, %v2547_v60  ;;  %v2623_v53 = vadd.f32 %v506_v23, %v2551_v61  ;;  %v3464_v16 = vsub.s32 2, %v2524_v48 }
 0x159   :  { %v347_v62 = vpop.f32.mrf.mxu0  ;;  %v508_v63 = vpop.f32.mrf.mxu1 }
 0x15a   :  { %3457 = vst [vmem:[#allocation36_spill] sm:$0xff] %v2620_v54  ;;  %3458 = vst [vmem:[#allocation37_spill] sm:$0xff] %v2623_v53  ;;  %v2629_v11 = vadd.f32 %v347_v62, %v2569_v13  ;;  %v2632_v18 = vadd.f32 %v508_v63, %v2556_v3  ;;  %v3463_v53 = vsub.s32 0, %v2524_v48  ;;  %v2646_v15 = vrot.slane %v581_v0, %v3464_v16 }
 0x15b   :  { %v351_v43 = vpop.f32.mrf.mxu0  ;;  %v512_v57 = vpop.f32.mrf.mxu1  ;;  %v3467_v16 = vsub.s32 3, %v2524_v48  ;;  %v2684_v48 = vadd.f32 %v2476_v22, %v2547_v60  ;;  %v2704_v22 = vadd.f32 %v2484_v27, %v2547_v60 }
 0x15c   :  { %3459 = vst [vmem:[#allocation38_spill] sm:$0xff] %v2629_v11  ;;  %3460 = vst [vmem:[#allocation39_spill] sm:$0xff] %v2632_v18  ;;  %v2635_v21 = vadd.f32 %v351_v43, %v2547_v60  ;;  %v2638_v23 = vadd.f32 %v512_v57, %v2551_v61  ;;  %v2642_v54 = vrot.slane %v581_v0, %v3463_v53 }
 0x15d   :  { %v353_v62 = vpop.f32.mrf.mxu0  ;;  %v514_v11 = vpop.f32.mrf.mxu1  ;;  %v2654_v57 = vrot.slane %v581_v0, %v181_v1  ;;  %v2664_v10 = vrot.slane %v581_v0, %v3467_v16  ;;  %v2672_v1 = vadd.f32 %v2470_v7, %v2551_v61  ;;  %v2692_v7 = vadd.f32 %v2480_v25, %v2569_v13  ;;  %3468 = vst [vmem:[#allocation44_spill] sm:$0xff] %v2704_v22 }
 0x15e   :  { %3461 = vst [vmem:[#allocation40_spill] sm:$0xff] %v2635_v21  ;;  %3462 = vst [vmem:[#allocation41_spill] sm:$0xff] %v2638_v23  ;;  %v2649_v63 = vadd.f32 %v353_v62, %v2569_v13  ;;  %v2652_v18 = vadd.f32 %v514_v11, %v2556_v3  ;;  %v2668_v62 = vadd.f32 %v2468_v2, %v2547_v60 }
 0x15f   :  { %v669_v43 = vpop.f32.mrf.mxu0  ;;  %v830_v21 = vpop.f32.mrf.mxu1  ;;  %v2688_v2 = vadd.f32 %v2478_v24, %v2551_v61 }
 0x160   :  { %3465 = vst [vmem:[#allocation42_spill] sm:$0xff] %v2649_v63  ;;  %3466 = vst [vmem:[#allocation43_spill] sm:$0xff] %v2652_v18  ;;  %v2657_v23 = vadd.f32 %v669_v43, %v2642_v54  ;;  %v2660_v53 = vadd.f32 %v830_v21, %v2646_v15  ;;  %v2676_v43 = vadd.f32 %v2472_v12, %v2569_v13 }
 0x161   :  { %v671_v11 = vpop.f32.mrf.mxu0  ;;  %v832_v18 = vpop.f32.mrf.mxu1  ;;  %v2680_v21 = vadd.f32 %v2474_v17, %v2556_v3  ;;  %v2700_v63 = vadd.f32 %v2482_v26, %v2556_v3  ;;  %v2720_v26 = vadd.f32 %v2490_v30, %v2556_v3 }
 0x162   :  { %v989_v0 = vmul.f32 0.70710677, %v2657_v23  ;;  %v2696_v12 = vadd.f32 %v671_v11, %v2654_v57  ;;  %v991_v24 = vmul.f32 0.70710677, %v2660_v53  ;;  %v2708_v25 = vadd.f32 %v832_v18, %v2664_v10 }
 0x163   :  { %v675_v16 = vpop.f32.mrf.mxu0  ;;  %v836_v17 = vpop.f32.mrf.mxu1  ;;  %v2716_v11 = vadd.f32 %v2488_v29, %v2569_v13  ;;  %v2727_v18 = vadd.f32 %v2492_v31, %v2547_v60  ;;  %v2735_v29 = vadd.f32 %v2496_v33, %v2569_v13  ;;  %v2754_v33 = vadd.f32 %v2502_v36, %v2551_v61 }
 0x164   :  { %v2723_v27 = vadd.f32 %v675_v16, %v2642_v54  ;;  %v2738_v30 = vadd.f32 %v836_v17, %v2646_v15  ;;  %v2742_v16 = vadd.f32 %v2498_v34, %v2556_v3  ;;  %1980 = verf.f32 %v989_v0 }
 0x165   :  { %v677_v8 = vpop.f32.mrf.mxu0  ;;  %v838_v20 = vpop.f32.mrf.mxu1  ;;  %3470 = vst [vmem:[#allocation46_spill] sm:$0xff] %v2727_v18  ;;  %3472 = vst [vmem:[#allocation48_spill] sm:$0xff] %v2735_v29  ;;  %v990_v19 = vmul.f32 0.70710677, %v2696_v12  ;;  %1982 = verf.f32 %v991_v24  ;;  %v992_v34 = vmul.f32 0.70710677, %v2708_v25  ;;  %v2759_v0 = vadd.f32 %v2504_v37, %v2569_v13 }
 0x166   :  { %3473 = vst [vmem:[#allocation49_spill] sm:$0xff] %v2742_v16  ;;  %v2746_v31 = vadd.f32 %v677_v8, %v2654_v57  ;;  %3475 = vst [vmem:[#allocation51_spill] sm:$0xff] %v2754_v33  ;;  %v2763_v8 = vadd.f32 %v2506_v38, %v2556_v3  ;;  %v993_v17 = vmul.f32 0.70710677, %v2723_v27  ;;  %v2767_v35 = vadd.f32 %v838_v20, %v2664_v10 }
 0x167   :  { %v681_v5 = vpop.f32.mrf.mxu0  ;;  %v842_v32 = vpop.f32.mrf.mxu1  ;;  %3476 = vst [vmem:[#allocation52_spill] sm:$0xff] %v2759_v0  ;;  %v2771_v36 = vadd.f32 %v2508_v39, %v2547_v60  ;;  %v2775_v24 = vadd.f32 %v2510_v40, %v2551_v61  ;;  %v995_v37 = vmul.f32 0.70710677, %v2738_v30  ;;  %v2783_v33 = vadd.f32 %v2512_v41, %v2569_v13 }
 0x168   :  { %3477 = vst [vmem:[#allocation53_spill] sm:$0xff] %v2763_v8  ;;  %v2779_v38 = vadd.f32 %v681_v5, %v2642_v54  ;;  %1984 = verf.f32 %v990_v19  ;;  %v994_v20 = vmul.f32 0.70710677, %v2746_v31  ;;  %v2787_v8 = vadd.f32 %v842_v32, %v2646_v15 }
 0x169   :  { %v683_v9 = vpop.f32.mrf.mxu0  ;;  %v844_v4 = vpop.f32.mrf.mxu1  ;;  %3478 = vst [vmem:[#allocation54_spill] sm:$0xff] %v2771_v36  ;;  %3479 = vst [vmem:[#allocation55_spill] sm:$0xff] %v2775_v24  ;;  %v2791_v40 = vadd.f32 %v2514_v42, %v2556_v3  ;;  %v2795_v5 = vadd.f32 %v2516_v44, %v2547_v60  ;;  %1986 = verf.f32 %v992_v34  ;;  %v2802_v19 = vadd.f32 %v2518_v45, %v2551_v61 }
 0x16a   :  { %3480 = vst [vmem:[#allocation56_spill] sm:$0xff] %v2783_v33  ;;  %v2798_v41 = vadd.f32 %v683_v9, %v2654_v57  ;;  %1988 = verf.f32 %v993_v17  ;;  %v996_v32 = vmul.f32 0.70710677, %v2767_v35  ;;  %v845_v24 = vadd.f32 %v844_v4, %v2664_v10 }
 0x16b   :  { %v687_v39 = vpop.f32.mrf.mxu0  ;;  %v848_v36 = vpop.f32.mrf.mxu1  ;;  %3481 = vst [vmem:[#allocation57_spill] sm:$0xff] %v2791_v40  ;;  %3482 = vst [vmem:[#allocation58_spill] sm:$0xff] %v2795_v5  ;;  %v2808_v40 = vadd.f32 %v2520_v46, %v2569_v13  ;;  %1990 = verf.f32 %v995_v37  ;;  %v997_v44 = vmul.f32 0.70710677, %v2779_v38  ;;  %v2814_v45 = vadd.f32 %v2522_v47, %v2556_v3 }
 0x16c   :  { %3483 = vst [vmem:[#allocation59_spill] sm:$0xff] %v2802_v19  ;;  %v688_v9 = vadd.f32 %v687_v39, %v2642_v54  ;;  %v2818_v34 = vadd.f32 %v2526_v49, %v2547_v60  ;;  %1992 = verf.f32 %v994_v20  ;;  %v999_v4 = vmul.f32 0.70710677, %v2787_v8 }
 0x16d   :  { %v689_v33 = vpop.f32.mrf.mxu0  ;;  %v850_v42 = vpop.f32.mrf.mxu1  ;;  %3484 = vst [vmem:[#allocation60_spill] sm:$0xff] %v2808_v40  ;;  %3485 = vst [vmem:[#allocation61_spill] sm:$0xff] %v2814_v45  ;;  %v2823_v46 = vadd.f32 %v2528_v50, %v2551_v61  ;;  %v2827_v37 = vadd.f32 %v2530_v51, %v2569_v13  ;;  %v2831_v47 = vadd.f32 %v2532_v52, %v2556_v3  ;;  %v998_v49 = vmul.f32 0.70710677, %v2798_v41 }
 0x16e   :  { %3486 = vst [vmem:[#allocation62_spill] sm:$0xff] %v2818_v34  ;;  %v2836_v20 = vadd.f32 %v2536_v55, %v2547_v60  ;;  %v2840_v39 = vadd.f32 %v2538_v56, %v2551_v61  ;;  %1994 = verf.f32 %v996_v32  ;;  %v1000_v50 = vmul.f32 0.70710677, %v845_v24 }
 0x16f   :  { %v693_v17 = vpop.f32.mrf.mxu0  ;;  %v854_v19 = vpop.f32.mrf.mxu1  ;;  %3487 = vst [vmem:[#allocation63_spill] sm:$0xff] %v2823_v46  ;;  %3488 = vst [vmem:[#allocation64_spill] sm:$0xff] %v2827_v37  ;;  %v2844_v51 = vadd.f32 %v2541_v58, %v2569_v13  ;;  %1996 = verf.f32 %v997_v44  ;;  %v1001_v52 = vmul.f32 0.70710677, %v688_v9  ;;  %v2849_v55 = vadd.f32 %v2543_v59, %v2556_v3 }
 0x170   :  { %3489 = vst [vmem:[#allocation65_spill] sm:$0xff] %v2831_v47  ;;  %3490 = vst [vmem:[#allocation66_spill] sm:$0xff] %v2836_v20  ;;  %v849_v47 = vadd.f32 %v848_v36, %v2646_v15  ;;  %v2853_v56 = vadd.f32 %v2564_v6, %v2569_v13  ;;  %1998 = verf.f32 %v999_v4  ;;  %v690_v60 = vadd.f32 %v689_v33, %v2654_v57 }
 0x171   :  { %3491 = vst [vmem:[#allocation67_spill] sm:$0xff] %v2840_v39  ;;  %v695_v46 = vpop.f32.mrf.mxu0  ;;  %v856_v34 = vpop.f32.mrf.mxu1  ;;  %3492 = vst [vmem:[#allocation68_spill] sm:$0xff] %v2844_v51  ;;  %v925_v58 = vmul.f32 0.5, %v2657_v23  ;;  %v927_v44 = vmul.f32 0.5, %v2660_v53  ;;  %v2859_v36 = vmul.f32 0.5, %v2696_v12  ;;  %2000 = verf.f32 %v998_v49 }
 0x172   :  { %3493 = vst [vmem:[#allocation69_spill] sm:$0xff] %v2849_v55  ;;  %3494 = vst [vmem:[#allocation70_spill] sm:$0xff] %v2853_v56  ;;  %v1981_v39 = vpop.eup %1980  ;;  %v2862_v3 = vmul.f32 0.5, %v2708_v25  ;;  %v2865_v6 = vmul.f32 0.5, %v2723_v27  ;;  %2002 = verf.f32 %v1000_v50  ;;  %v851_v13 = vadd.f32 %v850_v42, %v2664_v10 }
 0x173   :  { %v699_v61 = vpop.f32.mrf.mxu0  ;;  %v860_v32 = vpop.f32.mrf.mxu1  ;;  %v2873_v23 = vmul.f32 0.5, %v2738_v30  ;;  %v2876_v53 = vmul.f32 0.5, %v2746_v31  ;;  %2004 = verf.f32 %v1001_v52  ;;  %v1003_v12 = vmul.f32 0.70710677, %v849_v47 }
 0x174   :  { %v1983_v59 = vpop.eup %1982  ;;  %v1117_v25 = vadd.f32 1.0, %v1981_v39  ;;  %v2879_v49 = vmul.f32 0.5, %v2767_v35  ;;  %v1002_v27 = vmul.f32 0.70710677, %v690_v60  ;;  %v694_v50 = vadd.f32 %v693_v17, %v2642_v54 }
 0x175   :  { %v2868_v33 = vpop.f32.mrf.mxu0  ;;  %v2870_v4 = vpop.f32.mrf.mxu1  ;;  %v1119_v55 = vadd.f32 1.0, %v1983_v59  ;;  %v2887_v30 = vmul.f32 0.5, %v2779_v38  ;;  %v2890_v31 = vmul.f32 0.5, %v2787_v8  ;;  %v855_v39 = vadd.f32 %v854_v19, %v2646_v15 }
 0x176   :  { %v1985_v20 = vpop.eup %1984  ;;  %v2894_v35 = vmul.f32 0.5, %v2798_v41  ;;  %v2896_v51 = vmul.f32 0.5, %v845_v24  ;;  %v2898_v17 = vmul.f32 0.5, %v688_v9  ;;  %v1004_v37 = vmul.f32 0.70710677, %v851_v13 }
 0x177   :  { %v2882_v42 = vpop.f32.mrf.mxu0  ;;  %v2884_v56 = vpop.f32.mrf.mxu1  ;;  %v2904_v45 = vmul.f32 0.5, %v849_v47  ;;  %2006 = verf.f32 %v1003_v12  ;;  %v2906_v8 = vmul.f32 0.5, %v690_v60  ;;  %v2908_v19 = vmul.f32 0.5, %v851_v13 }
 0x178   :  { %v1987_v52 = vpop.eup %1986  ;;  %v1181_v41 = vmul.f32 %v1117_v25, %v925_v58  ;;  %2008 = verf.f32 %v1002_v27  ;;  %v1005_v24 = vmul.f32 0.70710677, %v694_v50  ;;  %v696_v9 = vadd.f32 %v695_v46, %v2654_v57 }
 0x179   :  { %v2900_v5 = vpop.f32.mrf.mxu0  ;;  %v2902_v59 = vpop.f32.mrf.mxu1  ;;  %v1183_v28 = vmul.f32 %v1119_v55, %v927_v44  ;;  %v1118_v18 = vadd.f32 1.0, %v1985_v20  ;;  %v1007_v16 = vmul.f32 0.70710677, %v855_v39  ;;  %v857_v29 = vadd.f32 %v856_v34, %v2664_v10 }
 0x17a   :  { %v1989_v38 = vpop.eup %1988  ;;  %v1120_v47 = vadd.f32 1.0, %v1987_v52  ;;  %2010 = verf.f32 %v1004_v37  ;;  %v2914_v60 = vmul.f32 0.5, %v694_v50  ;;  %v700_v13 = vadd.f32 %v699_v61, %v2642_v54 }
 0x17b   :  { %v1991_v40 = vpop.eup %1990  ;;  %v2912_v14 = vpop.f32.mrf.mxu0  ;;  %v1121_v25 = vadd.f32 1.0, %v1989_v38  ;;  %v2919_v46 = vmul.f32 0.5, %v855_v39  ;;  %v861_v20 = vadd.f32 %v860_v32, %v2646_v15  ;;  %v2923_v34 = vmul.f32 %v1181_v41, %v2668_v62 }
 0x17c   :  { %v1993_v0 = vpop.eup %1992  ;;  %v2917_v12 = vpop.f32.mrf.mxu1  ;;  %v1123_v27 = vadd.f32 1.0, %v1991_v40  ;;  %2012 = verf.f32 %v1005_v24  ;;  %v1006_v37 = vmul.f32 0.70710677, %v696_v9  ;;  %v1247_v52 = vmul.f32 %v1183_v28, %v2672_v1 }
 0x17d   :  { %v1995_v58 = vpop.eup %1994  ;;  %3495 = vst [vmem:[#allocation71_spill] sm:$0xff] %v2919_v46  ;;  %v1122_v44 = vadd.f32 1.0, %v1993_v0  ;;  %v1182_v61 = vmul.f32 %v1118_v18, %v2859_v36  ;;  %2014 = verf.f32 %v1007_v16  ;;  %v1008_v22 = vmul.f32 0.70710677, %v857_v29  ;;  %v2927_v38 = vpop.f32.mrf.mxu0 }
 0x17e   :  { %v1997_v55 = vpop.eup %1996  ;;  %v1184_v39 = vmul.f32 %v1120_v47, %v2862_v3  ;;  %v1124_v32 = vadd.f32 1.0, %v1995_v58  ;;  %v2930_v46 = vmul.f32 0.5, %v696_v9  ;;  %v1009_v62 = vmul.f32 0.70710677, %v700_v13  ;;  %v2932_v41 = vpop.f32.mrf.mxu1 }
 0x17f   :  { %v1999_v50 = vpop.eup %1998  ;;  %v2935_v24 = vmul.f32 %v1121_v25, %v2865_v6  ;;  %v2938_v1 = vmul.f32 %v1123_v27, %v2873_v23  ;;  %v1011_v18 = vmul.f32 0.70710677, %v861_v20  ;;  %v702_v28 = vadd.f32 %v2868_v33, %v2654_v57  ;;  %v2951_v23 = vpop.f32.mrf.mxu0 }
 0x180   :  { %v2001_v40 = vpop.eup %2000  ;;  %v1186_v36 = vmul.f32 %v1122_v44, %v2876_v53  ;;  %v1125_v3 = vadd.f32 1.0, %v1997_v55  ;;  %2016 = verf.f32 %v1006_v37  ;;  %v863_v9 = vadd.f32 %v2870_v4, %v2664_v10  ;;  %v2954_v53 = vpop.f32.mrf.mxu1 }
 0x181   :  { %v2003_v0 = vpop.eup %2002  ;;  %v1127_v47 = vadd.f32 1.0, %v1999_v50  ;;  %v2945_v58 = vmul.f32 0.5, %v857_v29  ;;  %2018 = verf.f32 %v1008_v22  ;;  %v2949_v6 = vadd.f32 %v2882_v42, %v2642_v54 }
 0x182   :  { %v2005_v16 = vpop.eup %2004  ;;  %v1188_v33 = vmul.f32 %v1124_v32, %v2879_v49  ;;  %v1126_v25 = vadd.f32 1.0, %v2001_v40  ;;  %v1128_v27 = vadd.f32 1.0, %v2003_v0  ;;  %2020 = verf.f32 %v1009_v62  ;;  %v2975_v0 = vpop.f32.mrf.mxu0 }
 0x183   :  { %v1129_v55 = vadd.f32 1.0, %v2005_v16  ;;  %2022 = verf.f32 %v1011_v18  ;;  %v1010_v4 = vmul.f32 0.70710677, %v702_v28  ;;  %v2958_v29 = vadd.f32 %v2884_v56, %v2646_v15 }
 0x184   :  { %v2007_v22 = vpop.eup %2006  ;;  %v1012_v44 = vmul.f32 0.70710677, %v863_v9  ;;  %v2962_v42 = vadd.f32 %v2900_v5, %v2654_v57  ;;  %v1246_v49 = vmul.f32 %v1182_v61, %v2676_v43  ;;  %v1248_v37 = vmul.f32 %v1184_v39, %v2680_v21 }
 0x185   :  { %v2009_v50 = vpop.eup %2008  ;;  %v2967_v40 = vmul.f32 %v1125_v3, %v2887_v30  ;;  %v2970_v32 = vmul.f32 %v1127_v47, %v2890_v31  ;;  %v2972_v62 = vmul.f32 0.5, %v700_v13  ;;  %v1013_v56 = vmul.f32 0.70710677, %v2949_v6  ;;  %v2989_v31 = vpop.f32.mrf.mxu1 }
 0x186   :  { %v2978_v5 = vmul.f32 %v1126_v25, %v2894_v35  ;;  %v2981_v43 = vmul.f32 %v1128_v27, %v2896_v51  ;;  %v2983_v21 = vmul.f32 0.5, %v861_v20  ;;  %v2987_v30 = vadd.f32 %v2902_v59, %v2664_v10  ;;  %1437 = vmatprep.mubr.f32.mxu0 %v1246_v49  ;;  %1582 = vmatprep.mubr.f32.mxu1 %v1248_v37 }
 0x187   :  { %v2011_v13 = vpop.eup %2010  ;;  %v1131_v61 = vadd.f32 1.0, %v2007_v22  ;;  %2024 = verf.f32 %v1010_v4  ;;  %v1015_v39 = vmul.f32 0.70710677, %v2958_v29  ;;  %v2994_v35 = vadd.f32 %v2912_v14, %v2642_v54  ;;  %1438 = vmatmul.mubr.f32.vlgmr.msra.gmra.mxu0 %v2923_v34  ;;  %1583 = vmatmul.mubr.f32.vlgmr.msra.gmra.mxu1 %v1247_v52  ;;  %v3011_v34 = vpop.f32.mrf.mxu0 }
 0x188   :  { %v2998_v51 = vmul.f32 %v1129_v55, %v2898_v17  ;;  %2026 = verf.f32 %v1012_v44  ;;  %v1014_v59 = vmul.f32 0.70710677, %v2962_v42  ;;  %v3003_v20 = vadd.f32 %v2917_v12, %v2646_v15  ;;  %v3016_v27 = vpop.f32.mrf.mxu1 }
 0x189   :  { %v2013_v18 = vpop.eup %2012  ;;  %v1130_v16 = vadd.f32 1.0, %v2009_v50  ;;  %v3005_v3 = vmul.f32 0.5, %v702_v28  ;;  %2028 = verf.f32 %v1013_v56  ;;  %v3009_v14 = vadd.f32 %v2927_v38, %v2654_v57  ;;  %v3036_v44 = vpop.f32.mrf.mxu0 }
 0x18a   :  { %v2015_v17 = vpop.eup %2014  ;;  %v1132_v52 = vadd.f32 1.0, %v2011_v13  ;;  %v1016_v47 = vmul.f32 0.70710677, %v2987_v30  ;;  %v1250_v25 = vmul.f32 %v1186_v36, %v2692_v7  ;;  %v1252_v12 = vmul.f32 %v1188_v33, %v2700_v63 }
 0x18b   :  { %v3018_v55 = vmul.f32 0.5, %v863_v9  ;;  %2030 = verf.f32 %v1015_v39  ;;  %v1017_v28 = vmul.f32 0.70710677, %v2994_v35  ;;  %v3023_v38 = vadd.f32 %v2932_v41, %v2664_v10  ;;  %v3059_v39 = vpop.f32.mrf.mxu0 }
 0x18c   :  { %v1133_v4 = vadd.f32 1.0, %v2013_v18  ;;  %2032 = verf.f32 %v1014_v59  ;;  %v1019_v22 = vmul.f32 0.70710677, %v3003_v20  ;;  %1442 = vmatprep.mubr.f32.mxu0 %v1250_v25  ;;  %1587 = vmatprep.mubr.f32.mxu1 %v1252_v12  ;;  %v1249_v63 = vmul.f32 %v2935_v24, %v2684_v48 }
 0x18d   :  { %v2017_v7 = vpop.eup %2016  ;;  %v3029_v36 = vmul.f32 %v1131_v61, %v2904_v45  ;;  %v1018_v9 = vmul.f32 0.70710677, %v3009_v14  ;;  %v718_v33 = vadd.f32 %v2951_v23, %v2642_v54  ;;  %v1251_v41 = vmul.f32 %v2938_v1, %v2688_v2  ;;  %v3045_v45 = vpop.f32.mrf.mxu1 }
 0x18e   :  { %v2019_v49 = vpop.eup %2018  ;;  %v1194_v37 = vmul.f32 %v1130_v16, %v2906_v8  ;;  %v3040_v50 = vmul.f32 %v1132_v52, %v2908_v19  ;;  %v3043_v48 = vmul.f32 0.5, %v2949_v6  ;;  %2034 = verf.f32 %v1016_v47  ;;  %1443 = vmatmul.mubr.f32.gmra.mxu0 %v1249_v63 }
 0x18f   :  { %v2021_v24 = vpop.eup %2020  ;;  %v1135_v23 = vadd.f32 1.0, %v2015_v17  ;;  %v3048_v56 = vmul.f32 0.5, %v2958_v29  ;;  %2036 = verf.f32 %v1017_v28  ;;  %v1020_v2 = vmul.f32 0.70710677, %v3023_v38  ;;  %1588 = vmatmul.mubr.f32.gmra.mxu1 %v1251_v41  ;;  %v3067_v16 = vpop.f32.mrf.mxu1  ;;  %v3496_v17 = vld [vmem:[#allocation71_spill] sm:$0xff] }
 0x190   :  { %v2023_v8 = vpop.eup %2022  ;;  %v3052_v19 = vmul.f32 %v1133_v4, %v2914_v60  ;;  %v3055_v1 = vmul.f32 0.5, %v2962_v42  ;;  %2038 = verf.f32 %v1019_v22  ;;  %v879_v6 = vadd.f32 %v2954_v53, %v2646_v15 }
 0x191   :  { %v1134_v13 = vadd.f32 1.0, %v2017_v7  ;;  %v1136_v61 = vadd.f32 1.0, %v2019_v49  ;;  %2040 = verf.f32 %v1018_v9  ;;  %v1021_v29 = vmul.f32 0.70710677, %v718_v33 }
 0x192   :  { %v1137_v59 = vadd.f32 1.0, %v2021_v24  ;;  %v720_v18 = vadd.f32 %v2975_v0, %v2654_v57  ;;  %v1254_v60 = vmul.f32 %v2978_v5, %v2716_v11  ;;  %v1256_v42 = vmul.f32 %v2981_v43, %v2720_v26  ;;  %v3497_v11 = vld [vmem:[#allocation44_spill] sm:$0xff]  ;;  %v3498_v5 = vld [vmem:[#allocation45_spill] sm:$0xff] }
 0x193   :  { %v3070_v53 = vmul.f32 %v1135_v23, %v3496_v17  ;;  %v1139_v52 = vadd.f32 1.0, %v2023_v8  ;;  %2042 = verf.f32 %v1020_v2  ;;  %v881_v47 = vadd.f32 %v2989_v31, %v2664_v10  ;;  %v3502_v17 = vld [vmem:[#allocation47_spill] sm:$0xff] }
 0x194   :  { %v2025_v25 = vpop.eup %2024  ;;  %v3075_v12 = vmul.f32 0.5, %v2987_v30  ;;  %v1023_v0 = vmul.f32 0.70710677, %v879_v6  ;;  %1447 = vmatprep.mubr.f32.mxu0 %v1254_v60  ;;  %1592 = vmatprep.mubr.f32.mxu1 %v1256_v42  ;;  %v1253_v26 = vmul.f32 %v2967_v40, %v3497_v11  ;;  %v1255_v43 = vmul.f32 %v2970_v32, %v3498_v5  ;;  %v3088_v30 = vpop.f32.mrf.mxu0  ;;  %v3501_v42 = vld [vmem:[#allocation46_spill] sm:$0xff] }
 0x195   :  { %v2027_v28 = vpop.eup %2026  ;;  %v1198_v4 = vmul.f32 %v1134_v13, %v2930_v46  ;;  %v3083_v22 = vmul.f32 0.5, %v2994_v35  ;;  %v3086_v31 = vmul.f32 0.5, %v3003_v20  ;;  %2044 = verf.f32 %v1021_v29  ;;  %v3099_v35 = vpop.f32.mrf.mxu1 }
 0x196   :  { %v2029_v63 = vpop.eup %2028  ;;  %v3091_v7 = vmul.f32 %v1136_v61, %v2945_v58  ;;  %v3094_v40 = vmul.f32 %v1137_v59, %v2972_v62  ;;  %v3097_v32 = vmul.f32 0.5, %v3009_v14  ;;  %v1022_v46 = vmul.f32 0.70710677, %v720_v18  ;;  %1448 = vmatmul.mubr.f32.gmra.mxu0 %v1253_v26  ;;  %1593 = vmatmul.mubr.f32.gmra.mxu1 %v1255_v43  ;;  %v3499_v14 = vld [vmem:[#allocation48_spill] sm:$0xff] }
 0x197   :  { %v3102_v20 = vmul.f32 %v1139_v52, %v2983_v21  ;;  %v1138_v9 = vadd.f32 1.0, %v2025_v25  ;;  %v3105_v41 = vmul.f32 0.5, %v3023_v38  ;;  %v1024_v58 = vmul.f32 0.70710677, %v881_v47  ;;  %v3116_v38 = vpop.f32.mrf.mxu0  ;;  %v3124_v59 = vpop.f32.mrf.mxu1 }
 0x198   :  { %v2031_v49 = vpop.eup %2030  ;;  %v3107_v24 = vmul.f32 0.5, %v718_v33  ;;  %2046 = verf.f32 %v1023_v0  ;;  %v724_v62 = vadd.f32 %v3011_v34, %v2642_v54  ;;  %v1258_v23 = vmul.f32 %v1194_v37, %v3499_v14  ;;  %v3500_v34 = vld [vmem:[#allocation49_spill] sm:$0xff] }
 0x199   :  { %v2033_v2 = vpop.eup %2032  ;;  %v1140_v8 = vadd.f32 1.0, %v2027_v28  ;;  %v1141_v13 = vadd.f32 1.0, %v2029_v63  ;;  %v3112_v61 = vmul.f32 0.5, %v879_v6  ;;  %v885_v21 = vadd.f32 %v3016_v27, %v2646_v15 }
 0x19a   :  { %v3118_v29 = vmul.f32 0.5, %v720_v18  ;;  %2048 = verf.f32 %v1022_v46  ;;  %v726_v33 = vadd.f32 %v3036_v44, %v2654_v57  ;;  %1452 = vmatprep.mubr.f32.mxu0 %v1258_v23  ;;  %v1260_v37 = vmul.f32 %v3040_v50, %v3500_v34 }
 0x19b   :  { %v2035_v60 = vpop.eup %2034  ;;  %v1143_v6 = vadd.f32 1.0, %v2031_v49  ;;  %2050 = verf.f32 %v1024_v58  ;;  %v1257_v27 = vmul.f32 %v2998_v51, %v3501_v42  ;;  %v1259_v18 = vmul.f32 %v3029_v36, %v3502_v17  ;;  %v737_v36 = vpop.f32.mrf.mxu0  ;;  %v3505_v42 = vld [vmem:[#allocation50_spill] sm:$0xff] }
 0x19c   :  { %v2037_v52 = vpop.eup %2036  ;;  %v1202_v25 = vmul.f32 %v1138_v9, %v3005_v3  ;;  %v1142_v0 = vadd.f32 1.0, %v2033_v2  ;;  %v1025_v44 = vmul.f32 0.70710677, %v724_v62  ;;  %v887_v11 = vadd.f32 %v3045_v45, %v2664_v10  ;;  %1597 = vmatprep.mubr.f32.mxu1 %v1260_v37  ;;  %v3503_v45 = vld [vmem:[#allocation52_spill] sm:$0xff]  ;;  %v898_v58 = vpop.f32.mrf.mxu1 }
 0x19d   :  { %v2039_v50 = vpop.eup %2038  ;;  %v1204_v26 = vmul.f32 %v1140_v8, %v3018_v55  ;;  %v3135_v5 = vmul.f32 %v1141_v13, %v3043_v48  ;;  %v3137_v43 = vmul.f32 0.5, %v881_v47  ;;  %v1027_v51 = vmul.f32 0.70710677, %v885_v21  ;;  %1453 = vmatmul.mubr.f32.gmra.mxu0 %v1257_v27  ;;  %1598 = vmatmul.mubr.f32.gmra.mxu1 %v1259_v18  ;;  %v3506_v27 = vld [vmem:[#allocation51_spill] sm:$0xff] }
 0x19e   :  { %v2041_v28 = vpop.eup %2040  ;;  %v1144_v3 = vadd.f32 1.0, %v2035_v60  ;;  %v1026_v63 = vmul.f32 0.70710677, %v726_v33  ;;  %v730_v46 = vadd.f32 %v3059_v39, %v2642_v54  ;;  %v1262_v9 = vmul.f32 %v1198_v4, %v3503_v45  ;;  %v3163_v60 = vpop.f32.mrf.mxu1 }
 0x19f   :  { %v3143_v55 = vmul.f32 %v1143_v6, %v3048_v56  ;;  %v1145_v48 = vadd.f32 1.0, %v2037_v52  ;;  %v3145_v49 = vmul.f32 0.5, %v724_v62  ;;  %v3147_v47 = vmul.f32 0.5, %v885_v21  ;;  %v3504_v56 = vld [vmem:[#allocation53_spill] sm:$0xff]  ;;  %v3156_v62 = vpop.f32.mrf.mxu0 }
 0x1a0   :  { %v2043_v14 = vpop.eup %2042  ;;  %v3150_v23 = vmul.f32 %v1142_v0, %v3055_v1  ;;  %2052 = verf.f32 %v1025_v44  ;;  %v1028_v2 = vmul.f32 0.70710677, %v887_v11  ;;  %v891_v39 = vadd.f32 %v3067_v16, %v2646_v15  ;;  %1457 = vmatprep.mubr.f32.mxu0 %v1262_v9 }
 0x1a1   :  { %v1147_v4 = vadd.f32 1.0, %v2039_v50  ;;  %v1146_v8 = vadd.f32 1.0, %v2041_v28  ;;  %2054 = verf.f32 %v1027_v51  ;;  %v1264_v13 = vmul.f32 %v3091_v7, %v3504_v56  ;;  %v3507_v50 = vld [vmem:[#allocation56_spill] sm:$0xff]  ;;  %v3508_v51 = vld [vmem:[#allocation57_spill] sm:$0xff] }
 0x1a2   :  { %v2045_v21 = vpop.eup %2044  ;;  %v3159_v34 = vmul.f32 %v1144_v3, %v3075_v12  ;;  %v3161_v1 = vmul.f32 0.5, %v726_v33  ;;  %2056 = verf.f32 %v1026_v63  ;;  %v1029_v37 = vmul.f32 0.70710677, %v730_v46 }
 0x1a3   :  { %v3166_v16 = vmul.f32 %v1145_v48, %v3083_v22  ;;  %v1148_v6 = vadd.f32 1.0, %v2043_v14  ;;  %1602 = vmatprep.mubr.f32.mxu1 %v1264_v13  ;;  %v1261_v7 = vmul.f32 %v3052_v19, %v3505_v42  ;;  %v1263_v17 = vmul.f32 %v3070_v53, %v3506_v27  ;;  %v743_v53 = vpop.f32.mrf.mxu0 }
 0x1a4   :  { %v3172_v18 = vmul.f32 0.5, %v887_v11  ;;  %2058 = verf.f32 %v1028_v2  ;;  %v1031_v12 = vmul.f32 0.70710677, %v891_v39  ;;  %v732_v33 = vadd.f32 %v3088_v30, %v2654_v57  ;;  %v3510_v2 = vld [vmem:[#allocation55_spill] sm:$0xff] }
 0x1a5   :  { %v2047_v52 = vpop.eup %2046  ;;  %v3177_v0 = vmul.f32 %v1147_v4, %v3086_v31  ;;  %v3180_v22 = vmul.f32 %v1146_v8, %v3097_v32  ;;  %v1149_v44 = vadd.f32 1.0, %v2045_v21  ;;  %v893_v19 = vadd.f32 %v3099_v35, %v2664_v10  ;;  %1458 = vmatmul.mubr.f32.gmra.mxu0 %v1261_v7  ;;  %1603 = vmatmul.mubr.f32.gmra.mxu1 %v1263_v17  ;;  %v904_v31 = vpop.f32.mrf.mxu1 }
 0x1a6   :  { %2060 = verf.f32 %v1029_v37  ;;  %v3185_v11 = vadd.f32 %v737_v36, %v2654_v57  ;;  %v1266_v30 = vmul.f32 %v1202_v25, %v3507_v50  ;;  %v1268_v28 = vmul.f32 %v1204_v26, %v3508_v51 }
 0x1a7   :  { %v2049_v3 = vpop.eup %2048  ;;  %v3190_v32 = vmul.f32 %v1148_v6, %v3105_v41  ;;  %v3192_v63 = vmul.f32 0.5, %v730_v46  ;;  %v3194_v45 = vmul.f32 0.5, %v891_v39  ;;  %v736_v35 = vadd.f32 %v3116_v38, %v2642_v54  ;;  %v3509_v46 = vld [vmem:[#allocation54_spill] sm:$0xff]  ;;  %v747_v39 = vpop.f32.mrf.mxu0  ;;  %v3511_v6 = vld [vmem:[#allocation60_spill] sm:$0xff] }
 0x1a8   :  { %v2051_v9 = vpop.eup %2050  ;;  %v1151_v48 = vadd.f32 1.0, %v2047_v52  ;;  %2062 = verf.f32 %v1031_v12  ;;  %v1030_v36 = vmul.f32 0.70710677, %v732_v33  ;;  %v3199_v25 = vadd.f32 %v898_v58, %v2664_v10  ;;  %1462 = vmatprep.mubr.f32.mxu0 %v1266_v30  ;;  %1607 = vmatprep.mubr.f32.mxu1 %v1268_v28  ;;  %v908_v13 = vpop.f32.mrf.mxu1 }
 0x1a9   :  { %v1032_v26 = vmul.f32 0.70710677, %v893_v19  ;;  %v3203_v41 = vadd.f32 %v3124_v59, %v2646_v15  ;;  %v1265_v14 = vmul.f32 %v3094_v40, %v3509_v46  ;;  %v1267_v38 = vmul.f32 %v3102_v20, %v3510_v2 }
 0x1aa   :  { %v3210_v4 = vmul.f32 %v1149_v44, %v3107_v24  ;;  %v1150_v8 = vadd.f32 1.0, %v2049_v3  ;;  %v3212_v58 = vmul.f32 0.5, %v732_v33  ;;  %v1034_v56 = vmul.f32 0.70710677, %v3185_v11  ;;  %v749_v33 = vpop.f32.mrf.mxu0 }
 0x1ab   :  { %v1152_v21 = vadd.f32 1.0, %v2051_v9  ;;  %v3215_v37 = vmul.f32 0.5, %v893_v19  ;;  %v1033_v59 = vmul.f32 0.70710677, %v736_v35  ;;  %1463 = vmatmul.mubr.f32.gmra.mxu0 %v1265_v14  ;;  %1608 = vmatmul.mubr.f32.gmra.mxu1 %v1267_v38  ;;  %v3218_v40 = vadd.f32 %v743_v53, %v2654_v57  ;;  %v3512_v19 = vld [vmem:[#allocation61_spill] sm:$0xff]  ;;  %v910_v53 = vpop.f32.mrf.mxu1 }
 0x1ac   :  { %2064 = verf.f32 %v1030_v36  ;;  %v1036_v20 = vmul.f32 0.70710677, %v3199_v25  ;;  %v3222_v24 = vadd.f32 %v904_v31, %v2664_v10  ;;  %v1270_v42 = vmul.f32 %v3150_v23, %v3511_v6  ;;  %v3513_v31 = vld [vmem:[#allocation58_spill] sm:$0xff]  ;;  %v753_v36 = vpop.f32.mrf.mxu0 }
 0x1ad   :  { %v2053_v7 = vpop.eup %2052  ;;  %v3227_v27 = vmul.f32 %v1151_v48, %v3112_v61  ;;  %2066 = verf.f32 %v1032_v26  ;;  %v1035_v17 = vmul.f32 0.70710677, %v3203_v41  ;;  %v3232_v12 = vadd.f32 %v3156_v62, %v2642_v54  ;;  %v3514_v48 = vld [vmem:[#allocation59_spill] sm:$0xff]  ;;  %v914_v14 = vpop.f32.mrf.mxu1 }
 0x1ae   :  { %v2055_v52 = vpop.eup %2054  ;;  %2068 = verf.f32 %v1034_v56  ;;  %v3236_v44 = vadd.f32 %v3163_v60, %v2646_v15  ;;  %v1038_v23 = vmul.f32 0.70710677, %v3218_v40  ;;  %1467 = vmatprep.mubr.f32.mxu0 %v1270_v42  ;;  %v1272_v61 = vmul.f32 %v3159_v34, %v3512_v19  ;;  %v3516_v56 = vld [vmem:[#allocation65_spill] sm:$0xff] }
 0x1af   :  { %v2057_v50 = vpop.eup %2056  ;;  %v3242_v30 = vmul.f32 %v1150_v8, %v3118_v29  ;;  %v3245_v62 = vmul.f32 %v1152_v21, %v3137_v43  ;;  %v3247_v51 = vmul.f32 0.5, %v736_v35  ;;  %2070 = verf.f32 %v1033_v59  ;;  %v3515_v8 = vld [vmem:[#allocation64_spill] sm:$0xff] }
 0x1b0   :  { %v1153_v28 = vadd.f32 1.0, %v2053_v7  ;;  %2072 = verf.f32 %v1036_v20  ;;  %v1040_v60 = vmul.f32 0.70710677, %v3222_v24  ;;  %1612 = vmatprep.mubr.f32.mxu1 %v1272_v61  ;;  %v1269_v3 = vmul.f32 %v3135_v5, %v3513_v31 }
 0x1b1   :  { %v2059_v34 = vpop.eup %2058  ;;  %v1155_v9 = vadd.f32 1.0, %v2055_v52  ;;  %2074 = verf.f32 %v1035_v17  ;;  %v1037_v29 = vmul.f32 0.70710677, %v3232_v12  ;;  %v1271_v43 = vmul.f32 %v3143_v55, %v3514_v48  ;;  %v916_v52 = vpop.f32.mrf.mxu1 }
 0x1b2   :  { %v1154_v35 = vadd.f32 1.0, %v2057_v50  ;;  %v1039_v26 = vmul.f32 0.70710677, %v3236_v44  ;;  %2076 = verf.f32 %v1038_v23  ;;  %1468 = vmatmul.mubr.f32.gmra.mxu0 %v1269_v3  ;;  %v3257_v46 = vadd.f32 %v749_v33, %v2654_v57 }
 0x1b3   :  { %v2061_v2 = vpop.eup %2060  ;;  %v3260_v5 = vadd.f32 %v747_v39, %v2642_v54  ;;  %1613 = vmatmul.mubr.f32.gmra.mxu1 %v1271_v43  ;;  %v3263_v38 = vadd.f32 %v910_v53, %v2664_v10  ;;  %v1274_v55 = vmul.f32 %v3180_v22, %v3515_v8  ;;  %v1276_v21 = vmul.f32 %v3190_v32, %v3516_v56  ;;  %v755_v32 = vpop.f32.mrf.mxu0 }
 0x1b4   :  { %v1156_v59 = vadd.f32 1.0, %v2059_v34  ;;  %2078 = verf.f32 %v1040_v60  ;;  %v3270_v20 = vadd.f32 %v908_v13, %v2646_v15  ;;  %v1042_v6 = vmul.f32 0.70710677, %v3257_v46  ;;  %v920_v48 = vpop.f32.mrf.mxu1 }
 0x1b5   :  { %v2063_v42 = vpop.eup %2062  ;;  %v3274_v39 = vmul.f32 0.5, %v3203_v41  ;;  %v3277_v7 = vmul.f32 0.5, %v3185_v11  ;;  %2080 = verf.f32 %v1037_v29  ;;  %v1044_v22 = vmul.f32 0.70710677, %v3263_v38  ;;  %1472 = vmatprep.mubr.f32.mxu0 %v1274_v55  ;;  %1617 = vmatprep.mubr.f32.mxu1 %v1276_v21 }
 0x1b6   :  { %v3281_v17 = vmul.f32 %v1153_v28, %v3145_v49  ;;  %v1157_v13 = vadd.f32 1.0, %v2061_v2  ;;  %v3284_v33 = vmul.f32 0.5, %v3199_v25  ;;  %2082 = verf.f32 %v1039_v26  ;;  %v3518_v28 = vld [vmem:[#allocation63_spill] sm:$0xff] }
 0x1b7   :  { %v3287_v41 = vmul.f32 %v1155_v9, %v3147_v47  ;;  %v1041_v11 = vmul.f32 0.70710677, %v3260_v5  ;;  %2084 = verf.f32 %v1042_v6  ;;  %v3291_v23 = vadd.f32 %v753_v36, %v2642_v54  ;;  %v3517_v47 = vld [vmem:[#allocation62_spill] sm:$0xff]  ;;  %v3519_v36 = vld [vmem:[#allocation68_spill] sm:$0xff] }
 0x1b8   :  { %v1218_v19 = vmul.f32 %v1154_v35, %v3161_v1  ;;  %v3295_v49 = vmul.f32 %v1156_v59, %v3172_v18  ;;  %v1043_v61 = vmul.f32 0.70710677, %v3270_v20  ;;  %2086 = verf.f32 %v1044_v22  ;;  %v759_v1 = vpop.f32.mrf.mxu0  ;;  %v3521_v22 = vld [vmem:[#allocation66_spill] sm:$0xff] }
 0x1b9   :  { %v2065_v25 = vpop.eup %2064  ;;  %v3299_v53 = vadd.f32 %v914_v14, %v2646_v15  ;;  %v1273_v50 = vmul.f32 %v3166_v16, %v3517_v47  ;;  %v1275_v60 = vmul.f32 %v3177_v0, %v3518_v28  ;;  %v3306_v31 = vadd.f32 %v755_v32, %v2654_v57  ;;  %v3520_v14 = vld [vmem:[#allocation69_spill] sm:$0xff]  ;;  %v922_v32 = vpop.f32.mrf.mxu1 }
 0x1ba   :  { %v2067_v3 = vpop.eup %2066  ;;  %v3309_v18 = vmul.f32 %v1157_v13, %v3192_v63  ;;  %v1159_v34 = vadd.f32 1.0, %v2063_v42  ;;  %v3312_v9 = vmul.f32 0.5, %v3218_v40  ;;  %v3315_v29 = vadd.f32 %v916_v52, %v2664_v10  ;;  %v761_v59 = vpop.f32.mrf.mxu0 }
 0x1bb   :  { %v2069_v16 = vpop.eup %2068  ;;  %2088 = verf.f32 %v1041_v11  ;;  %v1045_v0 = vmul.f32 0.70710677, %v3291_v23  ;;  %1473 = vmatmul.mubr.f32.gmra.mxu0 %v1273_v50  ;;  %1618 = vmatmul.mubr.f32.gmra.mxu1 %v1275_v60  ;;  %v1046_v43 = vmul.f32 0.70710677, %v3306_v31  ;;  %v1278_v63 = vmul.f32 %v3242_v30, %v3519_v36  ;;  %v3523_v60 = vld [vmem:[#allocation70_spill] sm:$0xff]  ;;  %v3525_v36 = vld [vmem:[#allocation17_spill] sm:$0xff] }
 0x1bc   :  { %v2071_v35 = vpop.eup %2070  ;;  %v1158_v26 = vadd.f32 1.0, %v2065_v25  ;;  %2090 = verf.f32 %v1043_v61  ;;  %v1048_v40 = vmul.f32 0.70710677, %v3315_v29  ;;  %v1280_v2 = vmul.f32 %v3245_v62, %v3520_v14  ;;  %v3527_v14 = vld [vmem:[#allocation22_spill] sm:$0xff] }
 0x1bd   :  { %v2073_v8 = vpop.eup %2072  ;;  %v1160_v55 = vadd.f32 1.0, %v2067_v3  ;;  %v1047_v56 = vmul.f32 0.70710677, %v3299_v53  ;;  %2092 = verf.f32 %v1046_v43  ;;  %1477 = vmatprep.mubr.f32.mxu0 %v1278_v63  ;;  %v3326_v21 = vadd.f32 %v759_v1, %v2642_v54  ;;  %v3522_v54 = vld [vmem:[#allocation67_spill] sm:$0xff] }
 0x1be   :  { %v2075_v6 = vpop.eup %2074  ;;  %v1162_v30 = vadd.f32 1.0, %v2069_v16  ;;  %2094 = verf.f32 %v1048_v40  ;;  %1622 = vmatprep.mubr.f32.mxu1 %v1280_v2  ;;  %v3329_v42 = vadd.f32 %v920_v48, %v2646_v15  ;;  %v1277_v62 = vmul.f32 %v3210_v4, %v3521_v22 }
 0x1bf   :  { %v2077_v13 = vpop.eup %2076  ;;  %v1223_v52 = vmul.f32 %v1159_v34, %v3194_v45  ;;  %2096 = verf.f32 %v1045_v0  ;;  %v1049_v11 = vmul.f32 0.70710677, %v3326_v21  ;;  %v1279_v61 = vmul.f32 %v3227_v27, %v3522_v54 }
 0x1c0   :  { %v1222_v25 = vmul.f32 %v1158_v26, %v3212_v58  ;;  %v1164_v47 = vadd.f32 1.0, %v2073_v8  ;;  %v1051_v50 = vmul.f32 0.70710677, %v3329_v42  ;;  %1478 = vmatmul.mubr.f32.gmra.mxu0 %v1277_v62  ;;  %v3340_v15 = vadd.f32 %v761_v59, %v2654_v57  ;;  %v3526_v26 = vld [vmem:[#allocation18_spill] sm:$0xff] }
 0x1c1   :  { %v2079_v4 = vpop.eup %2078  ;;  %v1224_v28 = vmul.f32 %v1160_v55, %v3215_v37  ;;  %2098 = verf.f32 %v1047_v56  ;;  %1623 = vmatmul.mubr.f32.gmra.mxu1 %v1279_v61  ;;  %v3344_v45 = vadd.f32 %v922_v32, %v2664_v10  ;;  %v1282_v1 = vmul.f32 %v1218_v19, %v3523_v60  ;;  %v3524_v37 = vld [vmem:[#allocation19_spill] sm:$0xff] }
 0x1c2   :  { %v2081_v27 = vpop.eup %2080  ;;  %v1161_v3 = vadd.f32 1.0, %v2071_v35  ;;  %v1226_v58 = vmul.f32 %v1162_v30, %v3277_v7  ;;  %2100 = verf.f32 %v1049_v11  ;;  %v1050_v34 = vmul.f32 0.70710677, %v3340_v15  ;;  %v3529_v30 = vld [vmem:[#allocation26_spill] sm:$0xff] }
 0x1c3   :  { %v2083_v48 = vpop.eup %2082  ;;  %v1166_v57 = vadd.f32 1.0, %v2077_v13  ;;  %2102 = verf.f32 %v1051_v50  ;;  %v1052_v16 = vmul.f32 0.70710677, %v3344_v45  ;;  %1482 = vmatprep.mubr.f32.mxu0 %v1282_v1  ;;  %v1284_v0 = vmul.f32 %v3295_v49, %v3524_v37 }
 0x1c4   :  { %v2085_v10 = vpop.eup %2084  ;;  %v1228_v43 = vmul.f32 %v1164_v47, %v3284_v33  ;;  %v1168_v19 = vadd.f32 1.0, %v2079_v4  ;;  %2104 = verf.f32 %v1050_v34  ;;  %v1281_v7 = vmul.f32 %v3281_v17, %v3525_v36  ;;  %v3528_v33 = vld [vmem:[#allocation23_spill] sm:$0xff] }
 0x1c5   :  { %v2087_v63 = vpop.eup %2086  ;;  %v1163_v35 = vadd.f32 1.0, %v2075_v6  ;;  %2106 = verf.f32 %v1052_v16  ;;  %1627 = vmatprep.mubr.f32.mxu1 %v1284_v0  ;;  %v1283_v40 = vmul.f32 %v3287_v41, %v3526_v26  ;;  %v1286_v2 = vmul.f32 %v1222_v25, %v3527_v14  ;;  %v3532_v25 = vld [vmem:[#allocation21_spill] sm:$0xff]  ;;  %v3535_v16 = vld [vmem:[#allocation31_spill] sm:$0xff]  ;;  %v3537_v14 = vld [vmem:[#allocation34_spill] sm:$0xff] }
 0x1c6   :  { %v973_v8 = vmul.f32 0.5, %v3232_v12  ;;  %v1165_v49 = vadd.f32 1.0, %v2081_v27  ;;  %v976_v55 = vmul.f32 0.5, %v3222_v24  ;;  %1483 = vmatmul.mubr.f32.gmra.mxu0 %v1281_v7  ;;  %v1288_v56 = vmul.f32 %v1224_v28, %v3528_v33  ;;  %v3530_v12 = vld [vmem:[#allocation20_spill] sm:$0xff]  ;;  %v3531_v24 = vld [vmem:[#allocation27_spill] sm:$0xff] }
 0x1c7   :  { %v1225_v59 = vmul.f32 %v1161_v3, %v3247_v51  ;;  %v1230_v17 = vmul.f32 %v1166_v57, %v3312_v9  ;;  %v1170_v6 = vadd.f32 1.0, %v2085_v10  ;;  %1628 = vmatmul.mubr.f32.gmra.mxu1 %v1283_v40  ;;  %1487 = vmatprep.mubr.f32.mxu0 %v1286_v2  ;;  %v1290_v22 = vmul.f32 %v1226_v58, %v3529_v30  ;;  %v3533_v58 = vld [vmem:[#allocation30_spill] sm:$0xff]  ;;  %v3536_v10 = vld [vmem:[#allocation25_spill] sm:$0xff] }
 0x1c8   :  { %v2089_v41 = vpop.eup %2088  ;;  %v1232_v62 = vmul.f32 %v1168_v19, %v976_v55  ;;  %v1172_v32 = vadd.f32 1.0, %v2087_v63  ;;  %1632 = vmatprep.mubr.f32.mxu1 %v1288_v56  ;;  %v1285_v13 = vmul.f32 %v3309_v18, %v3530_v12  ;;  %v1292_v11 = vmul.f32 %v1228_v43, %v3531_v24  ;;  %v3538_v55 = vld [vmem:[#allocation28_spill] sm:$0xff]  ;;  %v3539_v56 = vld [vmem:[#allocation35_spill] sm:$0xff] }
 0x1c9   :  { %v2091_v54 = vpop.eup %2090  ;;  %v1227_v61 = vmul.f32 %v1163_v35, %v3274_v39  ;;  %v1167_v51 = vadd.f32 1.0, %v2083_v48  ;;  %v978_v9 = vmul.f32 0.5, %v3257_v46  ;;  %v1287_v47 = vmul.f32 %v1223_v52, %v3532_v25  ;;  %v3534_v52 = vld [vmem:[#allocation24_spill] sm:$0xff]  ;;  %v3543_v25 = vld [vmem:[#allocation39_spill] sm:$0xff] }
 0x1ca   :  { %v2093_v50 = vpop.eup %2092  ;;  %v1229_v4 = vmul.f32 %v1165_v49, %v973_v8  ;;  %v975_v28 = vmul.f32 0.5, %v3236_v44  ;;  %v980_v60 = vmul.f32 0.5, %v3263_v38  ;;  %1488 = vmatmul.mubr.f32.gmra.mxu0 %v1285_v13  ;;  %v1169_v27 = vadd.f32 1.0, %v2089_v41 }
 0x1cb   :  { %v2095_v1 = vpop.eup %2094  ;;  %v1234_v18 = vmul.f32 %v1170_v6, %v978_v9  ;;  %v1174_v3 = vadd.f32 1.0, %v2093_v50  ;;  %1633 = vmatmul.mubr.f32.gmra.mxu1 %v1287_v47  ;;  %1492 = vmatprep.mubr.f32.mxu0 %v1290_v22  ;;  %v1294_v39 = vmul.f32 %v1230_v17, %v3533_v58  ;;  %v1289_v57 = vmul.f32 %v1225_v59, %v3534_v52 }
 0x1cc   :  { %v2097_v34 = vpop.eup %2096  ;;  %v1236_v48 = vmul.f32 %v1172_v32, %v980_v60  ;;  %v1176_v46 = vadd.f32 1.0, %v2095_v1  ;;  %1637 = vmatprep.mubr.f32.mxu1 %v1292_v11  ;;  %v1296_v37 = vmul.f32 %v1232_v62, %v3535_v16  ;;  %v1231_v44 = vmul.f32 %v1167_v51, %v975_v28  ;;  %v3541_v11 = vld [vmem:[#allocation38_spill] sm:$0xff]  ;;  %v3542_v51 = vld [vmem:[#allocation32_spill] sm:$0xff] }
 0x1cd   :  { %v1171_v0 = vadd.f32 1.0, %v2091_v54  ;;  %v982_v38 = vmul.f32 0.5, %v3306_v31  ;;  %v1291_v43 = vmul.f32 %v1227_v61, %v3536_v10  ;;  %v977_v36 = vmul.f32 0.5, %v3260_v5  ;;  %v3545_v1 = vld [vmem:[#allocation42_spill] sm:$0xff] }
 0x1ce   :  { %v2099_v19 = vpop.eup %2098  ;;  %v984_v7 = vmul.f32 0.5, %v3315_v29  ;;  %1493 = vmatmul.mubr.f32.gmra.mxu0 %v1289_v57  ;;  %v979_v35 = vmul.f32 0.5, %v3270_v20  ;;  %v1173_v26 = vadd.f32 1.0, %v2097_v34  ;;  %v1298_v2 = vmul.f32 %v1234_v18, %v3537_v14  ;;  %v3540_v20 = vld [vmem:[#allocation29_spill] sm:$0xff] }
 0x1cf   :  { %v2101_v63 = vpop.eup %2100  ;;  %v1238_v40 = vmul.f32 %v1174_v3, %v982_v38  ;;  %1638 = vmatmul.mubr.f32.gmra.mxu1 %v1291_v43  ;;  %1497 = vmatprep.mubr.f32.mxu0 %v1294_v39  ;;  %v1233_v49 = vmul.f32 %v1169_v27, %v977_v36  ;;  %v1293_v33 = vmul.f32 %v1229_v4, %v3538_v55  ;;  %v981_v17 = vmul.f32 0.5, %v3291_v23  ;;  %v3544_v4 = vld [vmem:[#allocation33_spill] sm:$0xff]  ;;  %v3546_v3 = vld [vmem:[#allocation36_spill] sm:$0xff]  ;;  %v3547_v39 = vld [vmem:[#allocation43_spill] sm:$0xff] }
 0x1d0   :  { %v2103_v8 = vpop.eup %2102  ;;  %v1240_v31 = vmul.f32 %v1176_v46, %v984_v7  ;;  %1642 = vmatprep.mubr.f32.mxu1 %v1296_v37  ;;  %v1300_v5 = vmul.f32 %v1236_v48, %v3539_v56  ;;  %v1235_v29 = vmul.f32 %v1171_v0, %v979_v35  ;;  %v1175_v6 = vadd.f32 1.0, %v2099_v19  ;;  %v3548_v46 = vld [vmem:[#allocation37_spill] sm:$0xff]  ;;  %v3403_v19 = vld [vmem:[%s3433_s6] ss:$0 sm:$0xff]  ;;  %s2246_s6 = smov [#allocation12]  }
 0x1d1   :  { %v2105_v59 = vpop.eup %2104  ;;  %v1295_v30 = vmul.f32 %v1231_v44, %v3540_v20  ;;  %v983_v41 = vmul.f32 0.5, %v3299_v53  ;;  %v986_v62 = vmul.f32 0.5, %v3340_v15  ;;  %v1237_v12 = vmul.f32 %v1173_v26, %v981_v17  ;;  %s1794_s28 = sshll.u32 %s2246_s6, 4  ;;  %s1795_s28 = int_to_ptr.vmem [resolvable:$true] %s1794_s28 }
 0x1d2   :  { %v2107_v22 = vpop.eup %2106  ;;  %v1178_v32 = vadd.f32 1.0, %v2105_v59  ;;  %1498 = vmatmul.mubr.f32.gmra.mxu0 %v1293_v33  ;;  %v988_v13 = vmul.f32 0.5, %v3344_v45  ;;  %v1302_v54 = vmul.f32 %v1238_v40, %v3541_v11  ;;  %v1177_v61 = vadd.f32 1.0, %v2101_v63  ;;  %s2208_s29 = scalar_lea.vmem %s1795_s28, 2048  ;;  %p2213_p12 = scmp.lt.s32.totalorder %s1795_s28, %s1795_s28 }
 0x1d3   :  { %v1180_v24 = vadd.f32 1.0, %v2107_v22  ;;  %1643 = vmatmul.mubr.f32.gmra.mxu1 %v1295_v30  ;;  %1502 = vmatprep.mubr.f32.mxu0 %v1298_v2  ;;  %v1297_v9 = vmul.f32 %v1233_v49, %v3542_v51  ;;  %v1304_v47 = vmul.f32 %v1240_v31, %v3543_v25  ;;  %v1239_v53 = vmul.f32 %v1175_v6, %v983_v41  ;;  %p2209_p11 = scmp.ne.s32.totalorder %s1795_s28, %s2208_s29  ;;  %p2214_p13 = scmp.lt.s32.totalorder %s2208_s29, %s2208_s29 }
 0x1d4   :  { %v1242_v23 = vmul.f32 %v1178_v32, %v986_v62  ;;  %1647 = vmatprep.mubr.f32.mxu1 %v1300_v5  ;;  %v1179_v50 = vadd.f32 1.0, %v2103_v8  ;;  %v1299_v28 = vmul.f32 %v1235_v29, %v3544_v4  ;;  %v985_v60 = vmul.f32 0.5, %v3326_v21  ;;  %v3549_v21 = vld [vmem:[#allocation40_spill] sm:$0xff] }
 0x1d5   :  { %v1244_v15 = vmul.f32 %v1180_v24, %v988_v13  ;;  %v987_v45 = vmul.f32 0.5, %v3329_v42  ;;  %v1301_v58 = vmul.f32 %v1237_v12, %v3546_v3  ;;  %v1303_v52 = vmul.f32 %v1239_v53, %v3548_v46  ;;  %v3550_v42 = vld [vmem:[#allocation41_spill] sm:$0xff]  ;;  %p2215_p0 = por %p2214_p13, %p2213_p12 }
 0x1d6   :  { %1503 = vmatmul.mubr.f32.gmra.mxu0 %v1297_v9  ;;  %v1306_v27 = vmul.f32 %v1242_v23, %v3545_v1  ;;  %v1241_v18 = vmul.f32 %v1177_v61, %v985_v60 }
 0x1d7   :  { %1648 = vmatmul.mubr.f32.gmra.mxu1 %v1299_v28  ;;  %1507 = vmatprep.mubr.f32.mxu0 %v1302_v54  ;;  %v1308_v34 = vmul.f32 %v1244_v15, %v3547_v39  ;;  %v1243_v48 = vmul.f32 %v1179_v50, %v987_v45  ;;  %p2216_p1 = pnand %p2215_p0, %p2209_p11 }
 0x1d8   :  { %1652 = vmatprep.mubr.f32.mxu1 %v1304_v47  ;;  %v1305_v57 = vmul.f32 %v1241_v18, %v3549_v21 }
 0x1d9   :  { %v1307_v16 = vmul.f32 %v1243_v48, %v3550_v42 }
 0x1da   :  { %1508 = vmatmul.mubr.f32.gmra.mxu0 %v1301_v58 }
 0x1db   :  { %1653 = vmatmul.mubr.f32.gmra.mxu1 %v1303_v52  ;;  %1512 = vmatprep.mubr.f32.mxu0 %v1306_v27 }
 0x1dc   :  { %1657 = vmatprep.mubr.f32.mxu1 %v1308_v34 }
 0x1de   :  { %1513 = vmatmul.mubr.f32.gmra.mxu0 %v1305_v57 }
 0x1df   :  { %1658 = vmatmul.mubr.f32.gmra.mxu1 %v1307_v16 }
 0x247   :  { %v1841_v37 = vpop.f32.mrf.mxu0  ;;  %v1921_v44 = vpop.f32.mrf.mxu1 }
 0x249   :  { %v1842_v0 = vpop.f32.mrf.mxu0  ;;  %v1922_v38 = vpop.f32.mrf.mxu1 }
 0x24a   :  { %v1843_v10 = vadd.f32 %v1842_v0, %v1841_v37  ;;  %v1923_v43 = vadd.f32 %v1922_v38, %v1921_v44 }
 0x24c   :  { %v1585_v36 = vadd.f32 %v1923_v43, %v1843_v10 }
 0x24e   :  { %v1757_v7 = vadd.f32 %v3403_v19, %v1585_v36  ;;  %v1844_v63 = vpop.f32.mrf.mxu0 }
 0x24f   :  { %v1924_v35 = vpop.f32.mrf.mxu1 }
 0x250   :  { %1773 = vst [vmem:[#allocation12] sm:$0xff] %v1757_v7  ;;  %v1845_v26 = vpop.f32.mrf.mxu0 }
 0x251   :  { %v1846_v40 = vadd.f32 %v1845_v26, %v1844_v63  ;;  %v1925_v14 = vpop.f32.mrf.mxu1 }
 0x252   :  { %v1926_v2 = vadd.f32 %v1925_v14, %v1924_v35 }
 0x254   :  { %v1590_v8 = vadd.f32 %v1926_v2, %v1846_v40 }
 0x256   :  { %v1758_v49 = vadd.f32 %v3403_v19, %v1590_v8  ;;  %v1847_v31 = vpop.f32.mrf.mxu0  ;;  %v1927_v55 = vpop.f32.mrf.mxu1 }
 0x258   :  { %1774 = vst [vmem:[#allocation12 + $0x8] sm:$0xff] %v1758_v49  ;;  %v1848_v33 = vpop.f32.mrf.mxu0  ;;  %v1928_v56 = vpop.f32.mrf.mxu1 }
 0x259   :  { %v1849_v5 = vadd.f32 %v1848_v33, %v1847_v31  ;;  %v1929_v59 = vadd.f32 %v1928_v56, %v1927_v55 }
 0x25b   :  { %v1595_v29 = vadd.f32 %v1929_v59, %v1849_v5 }
 0x25d   :  { %v1759_v17 = vadd.f32 %v3403_v19, %v1595_v29  ;;  %v1850_v6 = vpop.f32.mrf.mxu0  ;;  %v1930_v20 = vpop.f32.mrf.mxu1 }
 0x25f   :  { %1775 = vst [vmem:[#allocation12 + $0x10] sm:$0xff] %v1759_v17  ;;  %v1851_v30 = vpop.f32.mrf.mxu0  ;;  %v1931_v22 = vpop.f32.mrf.mxu1 }
 0x260   :  { %v1852_v41 = vadd.f32 %v1851_v30, %v1850_v6  ;;  %v1932_v62 = vadd.f32 %v1931_v22, %v1930_v20 }
 0x262   :  { %v1600_v32 = vadd.f32 %v1932_v62, %v1852_v41 }
 0x264   :  { %v1760_v12 = vadd.f32 %v3403_v19, %v1600_v32 }
 0x265   :  { %v1853_v13 = vpop.f32.mrf.mxu0  ;;  %v1933_v24 = vpop.f32.mrf.mxu1 }
 0x266   :  { %1776 = vst [vmem:[#allocation12 + $0x18] sm:$0xff] %v1760_v12 }
 0x267   :  { %v1854_v11 = vpop.f32.mrf.mxu0  ;;  %v1934_v54 = vpop.f32.mrf.mxu1 }
 0x268   :  { %v1855_v61 = vadd.f32 %v1854_v11, %v1853_v13  ;;  %v1935_v23 = vadd.f32 %v1934_v54, %v1933_v24 }
 0x26a   :  { %v1605_v51 = vadd.f32 %v1935_v23, %v1855_v61 }
 0x26b   :  { %v1856_v9 = vpop.f32.mrf.mxu0  ;;  %v1936_v25 = vpop.f32.mrf.mxu1 }
 0x26c   :  { %v1761_v47 = vadd.f32 %v3403_v19, %v1605_v51 }
 0x26d   :  { %v1857_v53 = vpop.f32.mrf.mxu0  ;;  %v1937_v50 = vpop.f32.mrf.mxu1 }
 0x26e   :  { %1777 = vst [vmem:[#allocation12 + $0x20] sm:$0xff] %v1761_v47  ;;  %v1858_v15 = vadd.f32 %v1857_v53, %v1856_v9  ;;  %v1938_v4 = vadd.f32 %v1937_v50, %v1936_v25 }
 0x270   :  { %v1610_v28 = vadd.f32 %v1938_v4, %v1858_v15 }
 0x272   :  { %v1762_v60 = vadd.f32 %v3403_v19, %v1610_v28  ;;  %v1859_v45 = vpop.f32.mrf.mxu0 }
 0x273   :  { %v1939_v1 = vpop.f32.mrf.mxu1 }
 0x274   :  { %1778 = vst [vmem:[#allocation12 + $0x28] sm:$0xff] %v1762_v60  ;;  %v1860_v27 = vpop.f32.mrf.mxu0 }
 0x275   :  { %v1861_v18 = vadd.f32 %v1860_v27, %v1859_v45  ;;  %v1940_v3 = vpop.f32.mrf.mxu1 }
 0x276   :  { %v1941_v58 = vadd.f32 %v1940_v3, %v1939_v1 }
 0x278   :  { %v1615_v39 = vadd.f32 %v1941_v58, %v1861_v18 }
 0x27a   :  { %v1763_v34 = vadd.f32 %v3403_v19, %v1615_v39 }
 0x27b   :  { %v1862_v48 = vpop.f32.mrf.mxu0  ;;  %v1942_v46 = vpop.f32.mrf.mxu1 }
 0x27c   :  { %1779 = vst [vmem:[#allocation12 + $0x30] sm:$0xff] %v1763_v34 }
 0x27d   :  { %v1863_v52 = vpop.f32.mrf.mxu0  ;;  %v1943_v21 = vpop.f32.mrf.mxu1 }
 0x27e   :  { %v1864_v57 = vadd.f32 %v1863_v52, %v1862_v48  ;;  %v1944_v42 = vadd.f32 %v1943_v21, %v1942_v46 }
 0x280   :  { %v1620_v16 = vadd.f32 %v1944_v42, %v1864_v57  ;;  %v1865_v37 = vpop.f32.mrf.mxu0 }
 0x281   :  { %v1945_v44 = vpop.f32.mrf.mxu1 }
 0x282   :  { %v1764_v0 = vadd.f32 %v3403_v19, %v1620_v16  ;;  %v1866_v38 = vpop.f32.mrf.mxu0 }
 0x283   :  { %v1867_v10 = vadd.f32 %v1866_v38, %v1865_v37  ;;  %v1946_v43 = vpop.f32.mrf.mxu1 }
 0x284   :  { %1780 = vst [vmem:[#allocation12 + $0x38] sm:$0xff] %v1764_v0  ;;  %v1947_v36 = vadd.f32 %v1946_v43, %v1945_v44 }
 0x286   :  { %v1625_v7 = vadd.f32 %v1947_v36, %v1867_v10  ;;  %v1868_v63 = vpop.f32.mrf.mxu0 }
 0x287   :  { %v1948_v35 = vpop.f32.mrf.mxu1 }
 0x288   :  { %v1765_v26 = vadd.f32 %v3403_v19, %v1625_v7  ;;  %v1869_v40 = vpop.f32.mrf.mxu0 }
 0x289   :  { %v1870_v14 = vadd.f32 %v1869_v40, %v1868_v63  ;;  %v1949_v2 = vpop.f32.mrf.mxu1 }
 0x28a   :  { %1781 = vst [vmem:[#allocation12 + $0x40] sm:$0xff] %v1765_v26  ;;  %v1950_v8 = vadd.f32 %v1949_v2, %v1948_v35  ;;  %v1871_v49 = vpop.f32.mrf.mxu0 }
 0x28b   :  { %v1951_v31 = vpop.f32.mrf.mxu1 }
 0x28c   :  { %v1630_v55 = vadd.f32 %v1950_v8, %v1870_v14  ;;  %v1872_v33 = vpop.f32.mrf.mxu0 }
 0x28d   :  { %v1873_v56 = vadd.f32 %v1872_v33, %v1871_v49  ;;  %v1952_v5 = vpop.f32.mrf.mxu1 }
 0x28e   :  { %v1766_v59 = vadd.f32 %v3403_v19, %v1630_v55  ;;  %v1953_v29 = vadd.f32 %v1952_v5, %v1951_v31  ;;  %v1874_v17 = vpop.f32.mrf.mxu0 }
 0x28f   :  { %v1954_v6 = vpop.f32.mrf.mxu1 }
 0x290   :  { %1782 = vst [vmem:[#allocation12 + $0x48] sm:$0xff] %v1766_v59  ;;  %v1635_v20 = vadd.f32 %v1953_v29, %v1873_v56  ;;  %v1875_v30 = vpop.f32.mrf.mxu0 }
 0x291   :  { %v1876_v22 = vadd.f32 %v1875_v30, %v1874_v17  ;;  %v1955_v41 = vpop.f32.mrf.mxu1 }
 0x292   :  { %v1767_v62 = vadd.f32 %v3403_v19, %v1635_v20  ;;  %v1956_v32 = vadd.f32 %v1955_v41, %v1954_v6  ;;  %v1877_v12 = vpop.f32.mrf.mxu0 }
 0x293   :  { %v1957_v13 = vpop.f32.mrf.mxu1 }
 0x294   :  { %1783 = vst [vmem:[#allocation12 + $0x50] sm:$0xff] %v1767_v62  ;;  %v1640_v24 = vadd.f32 %v1956_v32, %v1876_v22  ;;  %v1878_v11 = vpop.f32.mrf.mxu0 }
 0x295   :  { %v1879_v54 = vadd.f32 %v1878_v11, %v1877_v12  ;;  %v1958_v61 = vpop.f32.mrf.mxu1 }
 0x296   :  { %v1768_v23 = vadd.f32 %v3403_v19, %v1640_v24  ;;  %v1959_v51 = vadd.f32 %v1958_v61, %v1957_v13  ;;  %v1880_v9 = vpop.f32.mrf.mxu0 }
 0x297   :  { %v1960_v25 = vpop.f32.mrf.mxu1 }
 0x298   :  { %1784 = vst [vmem:[#allocation12 + $0x58] sm:$0xff] %v1768_v23  ;;  %v1645_v47 = vadd.f32 %v1959_v51, %v1879_v54  ;;  %v1881_v53 = vpop.f32.mrf.mxu0 }
 0x299   :  { %v1882_v50 = vadd.f32 %v1881_v53, %v1880_v9  ;;  %v1961_v15 = vpop.f32.mrf.mxu1 }
 0x29a   :  { %v1769_v4 = vadd.f32 %v3403_v19, %v1645_v47  ;;  %v1962_v28 = vadd.f32 %v1961_v15, %v1960_v25  ;;  %v1883_v60 = vpop.f32.mrf.mxu0 }
 0x29b   :  { %v1963_v45 = vpop.f32.mrf.mxu1 }
 0x29c   :  { %1785 = vst [vmem:[#allocation12 + $0x60] sm:$0xff] %v1769_v4  ;;  %v1650_v1 = vadd.f32 %v1962_v28, %v1882_v50  ;;  %v1884_v27 = vpop.f32.mrf.mxu0 }
 0x29d   :  { %v1885_v18 = vadd.f32 %v1884_v27, %v1883_v60  ;;  %v1964_v3 = vpop.f32.mrf.mxu1 }
 0x29e   :  { %v1770_v58 = vadd.f32 %v3403_v19, %v1650_v1  ;;  %v1965_v39 = vadd.f32 %v1964_v3, %v1963_v45  ;;  %v1886_v34 = vpop.f32.mrf.mxu0 }
 0x29f   :  { %v1966_v48 = vpop.f32.mrf.mxu1 }
 0x2a0   :  { %1786 = vst [vmem:[#allocation12 + $0x68] sm:$0xff] %v1770_v58  ;;  %v1655_v46 = vadd.f32 %v1965_v39, %v1885_v18  ;;  %v1887_v52 = vpop.f32.mrf.mxu0 }
 0x2a1   :  { %v1888_v21 = vadd.f32 %v1887_v52, %v1886_v34  ;;  %v1967_v57 = vpop.f32.mrf.mxu1 }
 0x2a2   :  { %v1771_v42 = vadd.f32 %v3403_v19, %v1655_v46  ;;  %v1968_v16 = vadd.f32 %v1967_v57, %v1966_v48 }
 0x2a4   :  { %1787 = vst [vmem:[#allocation12 + $0x70] sm:$0xff] %v1771_v42  ;;  %v1660_v37 = vadd.f32 %v1968_v16, %v1888_v21 }
 0x2a6   :  { %v1772_v44 = vadd.f32 %v3403_v19, %v1660_v37 }
 0x2a8   :  { %1788 = vst [vmem:[#allocation12 + $0x78] sm:$0xff] %v1772_v44 }
 0x2a9   :  { %2219 = shalt.err (!%p2216_p1)
}
 0x2aa   :  { %1800 = dma.vmem_to_hbm [thread:$0]  %s1795_s28, 2048, %s3434_s7, [#allocation5], %s2241_s1, %s2241_s1, %s2242_s16  }
 0x2ab   :  { %2234 = dma.done.wait [#allocation5], 2048  }
 0x2ac   :  { %2235 = vsyncadd [#allocation5], 4294965248 }
 0x2ad   :  { %1804 = vsyncpa [#allocation4], 1 }
 0x2ae   :  { %1805 = vsyncpa [#allocation7], 1 }
 0x2af   :  { %1806 = vsyncpa [#allocation10], 1 }
 0x2b0   :  { %1807 = vsyncpa [#allocation5], 1 }

</bundles_post_ra>
